<compile_context>
chip_gen: v7x
topology: tpu7x:2x2x1
jax: 0.10.0
libtpu: 0.0.40
codegen_flags: <defaults>
</compile_context>

<pallas_src>
import functools

import jax
import jax.numpy as jnp
import numpy as np
from jax.experimental import pallas as pl
from jax.experimental.pallas import tpu as pltpu

_BF16 = jnp.bfloat16
_F32 = jnp.float32


def _layernorm(x, g, b, eps=1e-5):
    mu = jnp.mean(x, axis=-1, keepdims=True)
    var = jnp.mean((x - mu) ** 2, axis=-1, keepdims=True)
    return (x - mu) * jax.lax.rsqrt(var + eps) * g + b


def _pick_seq_tile(L, target=256):
    """Query/sequence tile: full L for short sequences, else a divisor near `target`."""
    if L <= target:
        return L
    for t in (target, 128, 64, 32, 16, 8):
        if L % t == 0:
            return t
    return L


# -----------------------------------------------------------------------------
# Pass 1: QKV projection.  Plain [TL, D] x [D, 3D] matmul: bf16 MXU operands,
# f32 accumulate, bf16 output.
# -----------------------------------------------------------------------------
def qkv_project_kernel(x_ref, w_in_ref, b_in_ref, qkv_ref):
    x = x_ref[0].astype(_BF16)                                     # [TL, D]
    qkv = jnp.dot(x, w_in_ref[...], preferred_element_type=_F32)   # bf16 x bf16 -> f32
    qkv = qkv + b_in_ref[...]
    qkv_ref[0] = qkv.astype(qkv_ref.dtype)


# -----------------------------------------------------------------------------
# Pass 2: attention + output projection + LN1 + FFN + LN2 for one (batch, q-tile).
# TODO(synk): for very long L, additionally tile the KV axis with flash-style
#             online softmax so scores stay O(TQ * KV_TILE) instead of O(TQ * L).
# -----------------------------------------------------------------------------
def attn_ffn_kernel(x_ref, q_ref, k_ref, v_ref,
                    w_out_ref, b_out_ref, g1_ref, be1_ref,
                    w1_ref, b1_ref, w2_ref, b2_ref, g2_ref, be2_ref,
                    o_ref, *, use_causal_masking):
    x = x_ref[0]                       # [TQ, D] f32 (residual path stays f32)
    tq = x.shape[0]
    q3 = q_ref[0]                      # [H, TQ, hd] bf16
    k3 = k_ref[0]                      # [H, L,  hd] bf16 (VMEM-resident across q tiles)
    v3 = v_ref[0]                      # [H, L,  hd] bf16
    _, l, hd = k3.shape
    scale = float(hd) ** -0.5

    # ---- scaled dot-product attention, all heads batched on the MXU ----
    scores = jnp.einsum("hqd,hkd->hqk", q3, k3,
                        preferred_element_type=_F32) * scale       # [H, TQ, L] f32
    if use_causal_masking:
        q_start = pl.program_id(1) * tq
        q_pos = q_start + jax.lax.broadcasted_iota(jnp.int32, (1, tq, l), 1)
        k_pos = jax.lax.broadcasted_iota(jnp.int32, (1, tq, l), 2)
        scores = jnp.where(q_pos >= k_pos, scores, -1e30)          # inline mask, no [L,L] matrix
    # TODO(synk): training-mode attn_dropout (random log-mask) not implemented; eval only.

    scores = scores - jnp.max(scores, axis=-1, keepdims=True)      # f32 softmax
    p = jnp.exp(scores)
    probs = p * pl.reciprocal(jnp.sum(p, axis=-1, keepdims=True), approx=True)

    ctx = jnp.einsum("hqk,hkd->hqd", probs.astype(_BF16), v3,
                     preferred_element_type=_F32)                  # [H, TQ, hd]
    # Per-head output projection (W_out pre-reshaped to [H, hd, D] by the wrapper);
    # the sum over heads folds the concat away — no lane re-slicing.
    mha = jnp.einsum("hqd,hdo->hqo", ctx.astype(_BF16), w_out_ref[...],
                     preferred_element_type=_F32)                  # [H, TQ, D]
    mha = jnp.sum(mha, axis=0) + b_out_ref[...]                    # [TQ, D]

    # ---- residual + norm1 (f32) ----
    x1 = _layernorm(x + mha, g1_ref[...], be1_ref[...])

    # ---- affine1 + relu (relu_dropout is identity in eval mode) ----
    a1 = jnp.dot(x1.astype(_BF16), w1_ref[...],
                 preferred_element_type=_F32) + b1_ref[...]
    a1 = jnp.maximum(a1, 0.0)
    # TODO(synk): training-mode relu_dropout not implemented; eval only.

    # ---- affine2 + post-relu residual + norm2 (matches the reference module) ----
    a2 = jnp.dot(a1.astype(_BF16), w2_ref[...],
                 preferred_element_type=_F32) + b2_ref[...]
    out = _layernorm(a1 + a2, g2_ref[...], be2_ref[...])
    o_ref[0] = out.astype(o_ref.dtype)


def transformer_decoder_layer(x, params, *, nheads, use_causal_masking=False):
    """x: [B, L, D] float32; params: dict from init_params (linear weights as [in, out])."""
    B, L, D = x.shape
    hd = D // nheads
    TQ = _pick_seq_tile(L)
    num_q = L // TQ

    # Matmul weights in bf16 (2x MXU throughput, half the weight DMA/VMEM bytes);
    # biases and layernorm params stay f32 (applied after the f32 accumulate).
    # NOTE: for production shapes keep D a multiple of 128 so output stores are lane-dense.
    w_in = params["w_in"].astype(_BF16)
    b_in = params["b_in"].astype(_F32)
    w_out_h = params["w_out"].reshape(nheads, hd, D).astype(_BF16)    # [H, hd, D]
    b_out = params["b_out"].astype(_F32)
    g1, be1 = params["g1"], params["be1"]
    w1 = params["w1"].astype(_BF16)
    b1 = params["b1"].astype(_F32)
    w2 = params["w2"].astype(_BF16)
    b2 = params["b2"].astype(_F32)
    g2, be2 = params["g2"], params["be2"]

    vmem_limit = 64 * 1024 * 1024   # raise scoped default; still <= v7x physical VMEM

    # ---------------- pass 1: QKV projection ----------------
    ce1 = pl.CostEstimate(
        flops=2 * B * L * D * 3 * D,
        transcendentals=0,
        bytes_accessed=int(B * L * D * 4 + D * 3 * D * 2 + 3 * D * 4 + B * L * 3 * D * 2))
    qkv = pl.pallas_call(
        qkv_project_kernel,
        out_shape=jax.ShapeDtypeStruct((B, L, 3 * D), _BF16),
        grid=(B, num_q),
        in_specs=[pl.BlockSpec((1, TQ, D), lambda b, l: (b, l, 0)),
                  pl.BlockSpec((D, 3 * D), lambda b, l: (0, 0)),
                  pl.BlockSpec((1, 3 * D), lambda b, l: (0, 0))],
        out_specs=pl.BlockSpec((1, TQ, 3 * D), lambda b, l: (b, l, 0)),
        compiler_params=pltpu.CompilerParams(
            dimension_semantics=("parallel", "parallel"),
            vmem_limit_bytes=vmem_limit),
        cost_estimate=ce1,
    )(x, w_in, b_in)

    # Wrapper-side head split (layout plumbing done by XLA between the two kernels):
    # [B, L, 3D] -> 3 x [B, H, L, hd], so the attention kernel never slices/transposes heads.
    qkv4 = qkv.reshape(B, L, 3, nheads, hd)
    q = qkv4[:, :, 0].transpose(0, 2, 1, 3)
    k = qkv4[:, :, 1].transpose(0, 2, 1, 3)
    v = qkv4[:, :, 2].transpose(0, 2, 1, 3)

    # ---------------- pass 2: attention + FFN ----------------
    def full_spec(shape):
        nd = len(shape)
        return pl.BlockSpec(shape, lambda b, qi, _nd=nd: (0,) * _nd)

    ce2 = pl.CostEstimate(
        flops=4 * B * L * L * D + 6 * B * L * D * D,
        transcendentals=B * nheads * L * L + 8 * B * L,
        bytes_accessed=int(2 * B * L * D * 4 + 3 * B * L * D * 2
                           + 3 * D * D * 2 + 10 * D * 4))

    kernel = functools.partial(attn_ffn_kernel, use_causal_masking=use_causal_masking)
    out = pl.pallas_call(
        kernel,
        out_shape=jax.ShapeDtypeStruct((B, L, D), _F32),
        grid=(B, num_q),
        in_specs=[
            pl.BlockSpec((1, TQ, D), lambda b, qi: (b, qi, 0)),              # x (residual)
            pl.BlockSpec((1, nheads, TQ, hd), lambda b, qi: (b, 0, qi, 0)),  # q tile
            pl.BlockSpec((1, nheads, L, hd), lambda b, qi: (b, 0, 0, 0)),    # k (resident)
            pl.BlockSpec((1, nheads, L, hd), lambda b, qi: (b, 0, 0, 0)),    # v (resident)
            full_spec(w_out_h.shape), full_spec(b_out.shape),
            full_spec(g1.shape), full_spec(be1.shape),
            full_spec(w1.shape), full_spec(b1.shape),
            full_spec(w2.shape), full_spec(b2.shape),
            full_spec(g2.shape), full_spec(be2.shape),
        ],
        out_specs=pl.BlockSpec((1, TQ, D), lambda b, qi: (b, qi, 0)),
        compiler_params=pltpu.CompilerParams(
            dimension_semantics=("parallel", "parallel"),  # batch x q-tiles -> both TCs busy
            vmem_limit_bytes=vmem_limit),
        cost_estimate=ce2,
    )(x, q, k, v, w_out_h, b_out, g1, be1, w1, b1, w2, b2, g2, be2)
    return out


def init_params(key, dim):
    """Deterministic synthetic parameters. Linear weights stored as [in, out]."""
    ks = jax.random.split(key, 8)
    s = 0.05
    return {
        "w_in": jax.random.normal(ks[0], (dim, 3 * dim), jnp.float32) * s,
        "b_in": jax.random.normal(ks[1], (1, 3 * dim), jnp.float32) * s,
        "w_out": jax.random.normal(ks[2], (dim, dim), jnp.float32) * s,
        "b_out": jax.random.normal(ks[3], (1, dim), jnp.float32) * s,
        "g1": jnp.ones((1, dim), jnp.float32),
        "be1": jnp.zeros((1, dim), jnp.float32),
        "w1": jax.random.normal(ks[4], (dim, dim), jnp.float32) * s,
        "b1": jax.random.normal(ks[5], (1, dim), jnp.float32) * s,
        "w2": jax.random.normal(ks[6], (dim, dim), jnp.float32) * s,
        "b2": jax.random.normal(ks[7], (1, dim), jnp.float32) * s,
        "g2": jnp.ones((1, dim), jnp.float32),
        "be2": jnp.zeros((1, dim), jnp.float32),
    }


def reference_forward(x, p, *, nheads, use_causal_masking):
    """Pure-JAX f32 reference mirroring the PyTorch forward (eval mode)."""
    B, L, D = x.shape
    hd = D // nheads
    qkv = x @ p["w_in"] + p["b_in"]                       # [B, L, 3D]
    q, k, v = qkv[..., :D], qkv[..., D:2 * D], qkv[..., 2 * D:]
    qs = q.reshape(B, L, nheads, hd).transpose(0, 2, 1, 3)
    ks = k.reshape(B, L, nheads, hd).transpose(0, 2, 1, 3)
    vs = v.reshape(B, L, nheads, hd).transpose(0, 2, 1, 3)
    dots = jnp.einsum("bhqd,bhkd->bhqk", qs, ks) / np.sqrt(hd)
    if use_causal_masking:
        logmask = jnp.where(jnp.tril(jnp.ones((L, L))) > 0, 0.0, -1e30)
    else:
        logmask = jnp.zeros((L, L))
    w = jax.nn.softmax(dots + logmask, axis=-1)
    ave = jnp.einsum("bhqk,bhkd->bhqd", w, vs).transpose(0, 2, 1, 3).reshape(B, L, D)
    y = ave @ p["w_out"] + p["b_out"]

    def ln(z, g, b, eps=1e-5):
        mu = jnp.mean(z, -1, keepdims=True)
        var = jnp.mean((z - mu) ** 2, -1, keepdims=True)
        return (z - mu) * jax.lax.rsqrt(var + eps) * g + b

    x1 = ln(x + y, p["g1"], p["be1"])
    a1 = jax.nn.relu(x1 @ p["w1"] + p["b1"])
    return ln(a1 + (a1 @ p["w2"] + p["b2"]), p["g2"], p["be2"])


if __name__ == "__main__":
    B, L, D, H = 2, 8, 32, 4
    key = jax.random.PRNGKey(0)
    kx, kp = jax.random.split(key)
    x = jax.random.normal(kx, (B, L, D), jnp.float32)
    params = init_params(kp, D)

    fwd = jax.jit(functools.partial(transformer_decoder_layer,
                                    nheads=H, use_causal_masking=True))
    out = jax.block_until_ready(fwd(x, params))

    ref = reference_forward(x, params, nheads=H, use_causal_masking=True)
    # bf16 MXU operands -> compare against the f32 reference with bf16-level tolerance.
    np.testing.assert_allclose(np.asarray(out), np.asarray(ref), rtol=5e-2, atol=5e-2)

    print("KERNEL_OK")
</pallas_src>

<mosaic_0001>
module attributes {stable_mosaic.version = 11 : i64} {
  func.func @qkv_project_kernel(%arg0: i32, %arg1: i32, %arg2: memref<1x8x32xf32, #tpu.memory_space<vmem>>, %arg3: memref<32x96xbf16, #tpu.memory_space<vmem>>, %arg4: memref<1x96xf32, #tpu.memory_space<vmem>>, %arg5: memref<1x8x96xbf16, #tpu.memory_space<vmem>>) attributes {dimension_semantics = [#tpu.dimension_semantics<parallel>, #tpu.dimension_semantics<parallel>], iteration_bounds = array<i64: 2, 1>, scalar_prefetch = 0 : i64, scratch_operands = 0 : i64, tpu.core_type = #tpu.core_type<tc>, window_params = [{transform_indices = @transform_0, window_bounds = array<i64: 1, 8, 32>}, {pipeline_mode = #tpu.pipeline_mode<synchronous>, transform_indices = @transform_1, window_bounds = array<i64: 32, 96>}, {pipeline_mode = #tpu.pipeline_mode<synchronous>, transform_indices = @transform_2, window_bounds = array<i64: 1, 96>}, {transform_indices = @transform_3, window_bounds = array<i64: 1, 8, 96>}]} {
    %c0 = arith.constant 0 : index
    %c0_0 = arith.constant 0 : index
    %c0_1 = arith.constant 0 : index
    %0 = vector.load %arg2[%c0, %c0_0, %c0_1] : memref<1x8x32xf32, #tpu.memory_space<vmem>>, vector<1x8x32xf32>
    %1 = vector.shape_cast %0 : vector<1x8x32xf32> to vector<8x32xf32>
    %2 = arith.truncf %1 : vector<8x32xf32> to vector<8x32xbf16>
    %c0_2 = arith.constant 0 : index
    %c0_3 = arith.constant 0 : index
    %3 = vector.load %arg3[%c0_2, %c0_3] : memref<32x96xbf16, #tpu.memory_space<vmem>>, vector<32x96xbf16>
    %cst = arith.constant dense<0.000000e+00> : vector<8x96xf32>
    %4 = tpu.matmul %2, %3, %cst {dimension_numbers = #tpu.dot_dimension_numbers<[1], [0], [0], [1], [0, 0, 1, 1], [], []>} : vector<8x32xbf16>, vector<32x96xbf16>, vector<8x96xf32> -> vector<8x96xf32>
    %c0_4 = arith.constant 0 : index
    %c0_5 = arith.constant 0 : index
    %5 = vector.load %arg4[%c0_4, %c0_5] : memref<1x96xf32, #tpu.memory_space<vmem>>, vector<1x96xf32>
    %6 = vector.broadcast %5 : vector<1x96xf32> to vector<8x96xf32>
    %7 = arith.addf %4, %6 : vector<8x96xf32>
    %8 = arith.truncf %7 : vector<8x96xf32> to vector<8x96xbf16>
    %c0_6 = arith.constant 0 : index
    %c0_7 = arith.constant 0 : index
    %c0_8 = arith.constant 0 : index
    %9 = vector.load %arg5[%c0_6, %c0_7, %c0_8] : memref<1x8x96xbf16, #tpu.memory_space<vmem>>, vector<1x8x96xbf16>
    %10 = vector.shape_cast %9 : vector<1x8x96xbf16> to vector<8x96xbf16>
    %11 = vector.shape_cast %8 : vector<8x96xbf16> to vector<1x8x96xbf16>
    tpu.vector_store %arg5[%c0_6, %c0_7, %c0_8], %11 {strides = array<i32>} : memref<1x8x96xbf16, #tpu.memory_space<vmem>>, vector<1x8x96xbf16>,
    return
  }
  func.func @transform_0(%arg0: i32, %arg1: i32) -> (i32, i32, i32) {
    %c0_i32 = arith.constant 0 : i32
    %c0_i32_0 = arith.constant 0 : i32
    return %arg0, %arg1, %c0_i32 : i32, i32, i32
  }
  func.func @transform_1(%arg0: i32, %arg1: i32) -> (i32, i32) {
    %c0_i32 = arith.constant 0 : i32
    %c0_i32_0 = arith.constant 0 : i32
    %c0_i32_1 = arith.constant 0 : i32
    return %c0_i32, %c0_i32_0 : i32, i32
  }
  func.func @transform_2(%arg0: i32, %arg1: i32) -> (i32, i32) {
    %c0_i32 = arith.constant 0 : i32
    %c0_i32_0 = arith.constant 0 : i32
    %c0_i32_1 = arith.constant 0 : i32
    return %c0_i32, %c0_i32_0 : i32, i32
  }
  func.func @transform_3(%arg0: i32, %arg1: i32) -> (i32, i32, i32) {
    %c0_i32 = arith.constant 0 : i32
    %c0_i32_0 = arith.constant 0 : i32
    return %arg0, %arg1, %c0_i32 : i32, i32, i32
  }
}

module attributes {stable_mosaic.version = 11 : i64} {
  func.func @attn_ffn_kernel(%arg0: i32, %arg1: i32, %arg2: memref<1x8x32xf32, #tpu.memory_space<vmem>>, %arg3: memref<1x4x8x8xbf16, #tpu.memory_space<vmem>>, %arg4: memref<1x4x8x8xbf16, #tpu.memory_space<vmem>>, %arg5: memref<1x4x8x8xbf16, #tpu.memory_space<vmem>>, %arg6: memref<4x8x32xbf16, #tpu.memory_space<vmem>>, %arg7: memref<1x32xf32, #tpu.memory_space<vmem>>, %arg8: memref<1x32xf32, #tpu.memory_space<vmem>>, %arg9: memref<1x32xf32, #tpu.memory_space<vmem>>, %arg10: memref<32x32xbf16, #tpu.memory_space<vmem>>, %arg11: memref<1x32xf32, #tpu.memory_space<vmem>>, %arg12: memref<32x32xbf16, #tpu.memory_space<vmem>>, %arg13: memref<1x32xf32, #tpu.memory_space<vmem>>, %arg14: memref<1x32xf32, #tpu.memory_space<vmem>>, %arg15: memref<1x32xf32, #tpu.memory_space<vmem>>, %arg16: memref<1x8x32xf32, #tpu.memory_space<vmem>>) attributes {dimension_semantics = [#tpu.dimension_semantics<parallel>, #tpu.dimension_semantics<parallel>], iteration_bounds = array<i64: 2, 1>, scalar_prefetch = 0 : i64, scratch_operands = 0 : i64, tpu.core_type = #tpu.core_type<tc>, window_params = [{transform_indices = @transform_0, window_bounds = array<i64: 1, 8, 32>}, {transform_indices = @transform_1, window_bounds = array<i64: 1, 4, 8, 8>}, {transform_indices = @transform_2, window_bounds = array<i64: 1, 4, 8, 8>}, {transform_indices = @transform_3, window_bounds = array<i64: 1, 4, 8, 8>}, {pipeline_mode = #tpu.pipeline_mode<synchronous>, transform_indices = @transform_4, window_bounds = array<i64: 4, 8, 32>}, {pipeline_mode = #tpu.pipeline_mode<synchronous>, transform_indices = @transform_5, window_bounds = array<i64: 1, 32>}, {pipeline_mode = #tpu.pipeline_mode<synchronous>, transform_indices = @transform_6, window_bounds = array<i64: 1, 32>}, {pipeline_mode = #tpu.pipeline_mode<synchronous>, transform_indices = @transform_7, window_bounds = array<i64: 1, 32>}, {pipeline_mode = #tpu.pipeline_mode<synchronous>, transform_indices = @transform_8, window_bounds = array<i64: 32, 32>}, {pipeline_mode = #tpu.pipeline_mode<synchronous>, transform_indices = @transform_9, window_bounds = array<i64: 1, 32>}, {pipeline_mode = #tpu.pipeline_mode<synchronous>, transform_indices = @transform_10, window_bounds = array<i64: 32, 32>}, {pipeline_mode = #tpu.pipeline_mode<synchronous>, transform_indices = @transform_11, window_bounds = array<i64: 1, 32>}, {pipeline_mode = #tpu.pipeline_mode<synchronous>, transform_indices = @transform_12, window_bounds = array<i64: 1, 32>}, {pipeline_mode = #tpu.pipeline_mode<synchronous>, transform_indices = @transform_13, window_bounds = array<i64: 1, 32>}, {transform_indices = @transform_14, window_bounds = array<i64: 1, 8, 32>}]} {
    %c0 = arith.constant 0 : index
    %c0_0 = arith.constant 0 : index
    %c0_1 = arith.constant 0 : index
    %0 = vector.load %arg2[%c0, %c0_0, %c0_1] : memref<1x8x32xf32, #tpu.memory_space<vmem>>, vector<1x8x32xf32>
    %1 = vector.shape_cast %0 : vector<1x8x32xf32> to vector<8x32xf32>
    %c0_2 = arith.constant 0 : index
    %c0_3 = arith.constant 0 : index
    %c0_4 = arith.constant 0 : index
    %c0_5 = arith.constant 0 : index
    %2 = vector.load %arg3[%c0_2, %c0_3, %c0_4, %c0_5] : memref<1x4x8x8xbf16, #tpu.memory_space<vmem>>, vector<1x4x8x8xbf16>
    %3 = vector.shape_cast %2 : vector<1x4x8x8xbf16> to vector<4x8x8xbf16>
    %c0_6 = arith.constant 0 : index
    %c0_7 = arith.constant 0 : index
    %c0_8 = arith.constant 0 : index
    %c0_9 = arith.constant 0 : index
    %4 = vector.load %arg4[%c0_6, %c0_7, %c0_8, %c0_9] : memref<1x4x8x8xbf16, #tpu.memory_space<vmem>>, vector<1x4x8x8xbf16>
    %5 = vector.shape_cast %4 : vector<1x4x8x8xbf16> to vector<4x8x8xbf16>
    %c0_10 = arith.constant 0 : index
    %c0_11 = arith.constant 0 : index
    %c0_12 = arith.constant 0 : index
    %c0_13 = arith.constant 0 : index
    %6 = vector.load %arg5[%c0_10, %c0_11, %c0_12, %c0_13] : memref<1x4x8x8xbf16, #tpu.memory_space<vmem>>, vector<1x4x8x8xbf16>
    %7 = vector.shape_cast %6 : vector<1x4x8x8xbf16> to vector<4x8x8xbf16>
    "tpu.trace_start"() <{level = 10 : i32, message = "hqd,hkd->hqk"}> : () -> ()
    %cst = arith.constant dense<0.000000e+00> : vector<4x8x8xf32>
    %8 = tpu.matmul %3, %5, %cst {dimension_numbers = #tpu.dot_dimension_numbers<[2], [2], [1], [1], [0, 0, 0, 1, 1, 1], [0], [0]>} : vector<4x8x8xbf16>, vector<4x8x8xbf16>, vector<4x8x8xf32> -> vector<4x8x8xf32>
    "tpu.trace_stop"() : () -> ()
    %cst_14 = arith.constant 0.353553385 : f32
    %9 = vector.broadcast %cst_14 : f32 to vector<4x8x8xf32>
    %10 = arith.mulf %8, %9 : vector<4x8x8xf32>
    %c8_i32 = arith.constant 8 : i32
    %11 = arith.muli %arg1, %c8_i32 : i32
    %12 = tpu.iota {dimensions = array<i32: 1>} : vector<1x8x8xi32>
    %13 = vector.broadcast %11 : i32 to vector<1x8x8xi32>
    %14 = arith.addi %13, %12 : vector<1x8x8xi32>
    %15 = tpu.iota {dimensions = array<i32: 2>} : vector<1x8x8xi32>
    %16 = arith.cmpi sge, %14, %15 : vector<1x8x8xi32>
    %cst_15 = arith.constant -1.000000e+30 : f32
    %17 = vector.shape_cast %16 : vector<1x8x8xi1> to vector<1x8x8xi1>
    %18 = vector.broadcast %17 : vector<1x8x8xi1> to vector<4x8x8xi1>
    %19 = vector.broadcast %cst_15 : f32 to vector<4x8x8xf32>
    %20 = arith.select %18, %10, %19 : vector<4x8x8xi1>, vector<4x8x8xf32>
    %cst_16 = arith.constant dense<0xFF800000> : vector<4x8xf32>
    %21 = vector.multi_reduction <maximumf>, %20, %cst_16 [2] : vector<4x8x8xf32> to vector<4x8xf32>
    %22 = vector.shape_cast %21 : vector<4x8xf32> to vector<4x8x1xf32>
    %23 = vector.broadcast %22 : vector<4x8x1xf32> to vector<4x8x8xf32>
    %24 = arith.subf %20, %23 : vector<4x8x8xf32>
    %25 = math.exp %24 : vector<4x8x8xf32>
    %cst_17 = arith.constant dense<0.000000e+00> : vector<4x8xf32>
    %26 = vector.multi_reduction <add>, %25, %cst_17 [2] : vector<4x8x8xf32> to vector<4x8xf32>
    %27 = vector.shape_cast %26 : vector<4x8xf32> to vector<4x8x1xf32>
    %28 = tpu.reciprocal %27 {approx = true} : vector<4x8x1xf32> -> vector<4x8x1xf32>
    %29 = vector.broadcast %28 : vector<4x8x1xf32> to vector<4x8x8xf32>
    %30 = arith.mulf %25, %29 : vector<4x8x8xf32>
    %31 = arith.truncf %30 : vector<4x8x8xf32> to vector<4x8x8xbf16>
    "tpu.trace_start"() <{level = 10 : i32, message = "hqk,hkd->hqd"}> : () -> ()
    %cst_18 = arith.constant dense<0.000000e+00> : vector<4x8x8xf32>
    %32 = tpu.matmul %31, %7, %cst_18 {dimension_numbers = #tpu.dot_dimension_numbers<[2], [1], [1], [2], [0, 0, 0, 1, 1, 2], [0], [0]>} : vector<4x8x8xbf16>, vector<4x8x8xbf16>, vector<4x8x8xf32> -> vector<4x8x8xf32>
    "tpu.trace_stop"() : () -> ()
    %33 = arith.truncf %32 : vector<4x8x8xf32> to vector<4x8x8xbf16>
    %c0_19 = arith.constant 0 : index
    %c0_20 = arith.constant 0 : index
    %c0_21 = arith.constant 0 : index
    %34 = vector.load %arg6[%c0_19, %c0_20, %c0_21] : memref<4x8x32xbf16, #tpu.memory_space<vmem>>, vector<4x8x32xbf16>
    "tpu.trace_start"() <{level = 10 : i32, message = "hqd,hdo->hqo"}> : () -> ()
    %cst_22 = arith.constant dense<0.000000e+00> : vector<4x8x32xf32>
    %35 = tpu.matmul %33, %34, %cst_22 {dimension_numbers = #tpu.dot_dimension_numbers<[2], [1], [1], [2], [0, 0, 0, 1, 1, 2], [0], [0]>} : vector<4x8x8xbf16>, vector<4x8x32xbf16>, vector<4x8x32xf32> -> vector<4x8x32xf32>
    "tpu.trace_stop"() : () -> ()
    %cst_23 = arith.constant dense<0.000000e+00> : vector<8x32xf32>
    %36 = vector.multi_reduction <add>, %35, %cst_23 [0] : vector<4x8x32xf32> to vector<8x32xf32>
    %c0_24 = arith.constant 0 : index
    %c0_25 = arith.constant 0 : index
    %37 = vector.load %arg7[%c0_24, %c0_25] : memref<1x32xf32, #tpu.memory_space<vmem>>, vector<1x32xf32>
    %38 = vector.broadcast %37 : vector<1x32xf32> to vector<8x32xf32>
    %39 = arith.addf %36, %38 : vector<8x32xf32>
    %40 = arith.addf %1, %39 : vector<8x32xf32>
    %c0_26 = arith.constant 0 : index
    %c0_27 = arith.constant 0 : index
    %41 = vector.load %arg8[%c0_26, %c0_27] : memref<1x32xf32, #tpu.memory_space<vmem>>, vector<1x32xf32>
    %c0_28 = arith.constant 0 : index
    %c0_29 = arith.constant 0 : index
    %42 = vector.load %arg9[%c0_28, %c0_29] : memref<1x32xf32, #tpu.memory_space<vmem>>, vector<1x32xf32>
    %cst_30 = arith.constant dense<0.000000e+00> : vector<8xf32>
    %43 = vector.multi_reduction <add>, %40, %cst_30 [1] : vector<8x32xf32> to vector<8xf32>
    %44 = vector.shape_cast %43 : vector<8xf32> to vector<8x1xf32>
    %cst_31 = arith.constant 3.200000e+01 : f32
    %45 = vector.broadcast %cst_31 : f32 to vector<8x1xf32>
    %46 = arith.divf %44, %45 : vector<8x1xf32>
    %47 = vector.broadcast %46 : vector<8x1xf32> to vector<8x32xf32>
    %48 = arith.subf %40, %47 : vector<8x32xf32>
    %49 = arith.mulf %48, %48 : vector<8x32xf32>
    %cst_32 = arith.constant dense<0.000000e+00> : vector<8xf32>
    %50 = vector.multi_reduction <add>, %49, %cst_32 [1] : vector<8x32xf32> to vector<8xf32>
    %51 = vector.shape_cast %50 : vector<8xf32> to vector<8x1xf32>
    %cst_33 = arith.constant 3.200000e+01 : f32
    %52 = vector.broadcast %cst_33 : f32 to vector<8x1xf32>
    %53 = arith.divf %51, %52 : vector<8x1xf32>
    %54 = vector.broadcast %46 : vector<8x1xf32> to vector<8x32xf32>
    %55 = arith.subf %40, %54 : vector<8x32xf32>
    %cst_34 = arith.constant 9.99999974E-6 : f32
    %56 = vector.broadcast %cst_34 : f32 to vector<8x1xf32>
    %57 = arith.addf %53, %56 : vector<8x1xf32>
    %58 = math.rsqrt %57 : vector<8x1xf32>
    %59 = vector.broadcast %58 : vector<8x1xf32> to vector<8x32xf32>
    %60 = arith.mulf %55, %59 : vector<8x32xf32>
    %61 = vector.broadcast %41 : vector<1x32xf32> to vector<8x32xf32>
    %62 = arith.mulf %60, %61 : vector<8x32xf32>
    %63 = vector.broadcast %42 : vector<1x32xf32> to vector<8x32xf32>
    %64 = arith.addf %62, %63 : vector<8x32xf32>
    %65 = arith.truncf %64 : vector<8x32xf32> to vector<8x32xbf16>
    %c0_35 = arith.constant 0 : index
    %c0_36 = arith.constant 0 : index
    %66 = vector.load %arg10[%c0_35, %c0_36] : memref<32x32xbf16, #tpu.memory_space<vmem>>, vector<32x32xbf16>
    %cst_37 = arith.constant dense<0.000000e+00> : vector<8x32xf32>
    %67 = tpu.matmul %65, %66, %cst_37 {dimension_numbers = #tpu.dot_dimension_numbers<[1], [0], [0], [1], [0, 0, 1, 1], [], []>} : vector<8x32xbf16>, vector<32x32xbf16>, vector<8x32xf32> -> vector<8x32xf32>
    %c0_38 = arith.constant 0 : index
    %c0_39 = arith.constant 0 : index
    %68 = vector.load %arg11[%c0_38, %c0_39] : memref<1x32xf32, #tpu.memory_space<vmem>>, vector<1x32xf32>
    %69 = vector.broadcast %68 : vector<1x32xf32> to vector<8x32xf32>
    %70 = arith.addf %67, %69 : vector<8x32xf32>
    %cst_40 = arith.constant 0.000000e+00 : f32
    %71 = vector.broadcast %cst_40 : f32 to vector<8x32xf32>
    %72 = arith.maximumf %70, %71 : vector<8x32xf32>
    %73 = arith.truncf %72 : vector<8x32xf32> to vector<8x32xbf16>
    %c0_41 = arith.constant 0 : index
    %c0_42 = arith.constant 0 : index
    %74 = vector.load %arg12[%c0_41, %c0_42] : memref<32x32xbf16, #tpu.memory_space<vmem>>, vector<32x32xbf16>
    %cst_43 = arith.constant dense<0.000000e+00> : vector<8x32xf32>
    %75 = tpu.matmul %73, %74, %cst_43 {dimension_numbers = #tpu.dot_dimension_numbers<[1], [0], [0], [1], [0, 0, 1, 1], [], []>} : vector<8x32xbf16>, vector<32x32xbf16>, vector<8x32xf32> -> vector<8x32xf32>
    %c0_44 = arith.constant 0 : index
    %c0_45 = arith.constant 0 : index
    %76 = vector.load %arg13[%c0_44, %c0_45] : memref<1x32xf32, #tpu.memory_space<vmem>>, vector<1x32xf32>
    %77 = vector.broadcast %76 : vector<1x32xf32> to vector<8x32xf32>
    %78 = arith.addf %75, %77 : vector<8x32xf32>
    %79 = arith.addf %72, %78 : vector<8x32xf32>
    %c0_46 = arith.constant 0 : index
    %c0_47 = arith.constant 0 : index
    %80 = vector.load %arg14[%c0_46, %c0_47] : memref<1x32xf32, #tpu.memory_space<vmem>>, vector<1x32xf32>
    %c0_48 = arith.constant 0 : index
    %c0_49 = arith.constant 0 : index
    %81 = vector.load %arg15[%c0_48, %c0_49] : memref<1x32xf32, #tpu.memory_space<vmem>>, vector<1x32xf32>
    %cst_50 = arith.constant dense<0.000000e+00> : vector<8xf32>
    %82 = vector.multi_reduction <add>, %79, %cst_50 [1] : vector<8x32xf32> to vector<8xf32>
    %83 = vector.shape_cast %82 : vector<8xf32> to vector<8x1xf32>
    %cst_51 = arith.constant 3.200000e+01 : f32
    %84 = vector.broadcast %cst_51 : f32 to vector<8x1xf32>
    %85 = arith.divf %83, %84 : vector<8x1xf32>
    %86 = vector.broadcast %85 : vector<8x1xf32> to vector<8x32xf32>
    %87 = arith.subf %79, %86 : vector<8x32xf32>
    %88 = arith.mulf %87, %87 : vector<8x32xf32>
    %cst_52 = arith.constant dense<0.000000e+00> : vector<8xf32>
    %89 = vector.multi_reduction <add>, %88, %cst_52 [1] : vector<8x32xf32> to vector<8xf32>
    %90 = vector.shape_cast %89 : vector<8xf32> to vector<8x1xf32>
    %cst_53 = arith.constant 3.200000e+01 : f32
    %91 = vector.broadcast %cst_53 : f32 to vector<8x1xf32>
    %92 = arith.divf %90, %91 : vector<8x1xf32>
    %93 = vector.broadcast %85 : vector<8x1xf32> to vector<8x32xf32>
    %94 = arith.subf %79, %93 : vector<8x32xf32>
    %cst_54 = arith.constant 9.99999974E-6 : f32
    %95 = vector.broadcast %cst_54 : f32 to vector<8x1xf32>
    %96 = arith.addf %92, %95 : vector<8x1xf32>
    %97 = math.rsqrt %96 : vector<8x1xf32>
    %98 = vector.broadcast %97 : vector<8x1xf32> to vector<8x32xf32>
    %99 = arith.mulf %94, %98 : vector<8x32xf32>
    %100 = vector.broadcast %80 : vector<1x32xf32> to vector<8x32xf32>
    %101 = arith.mulf %99, %100 : vector<8x32xf32>
    %102 = vector.broadcast %81 : vector<1x32xf32> to vector<8x32xf32>
    %103 = arith.addf %101, %102 : vector<8x32xf32>
    %c0_55 = arith.constant 0 : index
    %c0_56 = arith.constant 0 : index
    %c0_57 = arith.constant 0 : index
    %104 = vector.load %arg16[%c0_55, %c0_56, %c0_57] : memref<1x8x32xf32, #tpu.memory_space<vmem>>, vector<1x8x32xf32>
    %105 = vector.shape_cast %104 : vector<1x8x32xf32> to vector<8x32xf32>
    %106 = vector.shape_cast %103 : vector<8x32xf32> to vector<1x8x32xf32>
    tpu.vector_store %arg16[%c0_55, %c0_56, %c0_57], %106 {strides = array<i32>} : memref<1x8x32xf32, #tpu.memory_space<vmem>>, vector<1x8x32xf32>,
    return
  }
  func.func @transform_0(%arg0: i32, %arg1: i32) -> (i32, i32, i32) {
    %c0_i32 = arith.constant 0 : i32
    %c0_i32_0 = arith.constant 0 : i32
    return %arg0, %arg1, %c0_i32 : i32, i32, i32
  }
  func.func @transform_1(%arg0: i32, %arg1: i32) -> (i32, i32, i32, i32) {
    %c0_i32 = arith.constant 0 : i32
    %c0_i32_0 = arith.constant 0 : i32
    %c0_i32_1 = arith.constant 0 : i32
    return %arg0, %c0_i32, %arg1, %c0_i32_0 : i32, i32, i32, i32
  }
  func.func @transform_2(%arg0: i32, %arg1: i32) -> (i32, i32, i32, i32) {
    %c0_i32 = arith.constant 0 : i32
    %c0_i32_0 = arith.constant 0 : i32
    %c0_i32_1 = arith.constant 0 : i32
    %c0_i32_2 = arith.constant 0 : i32
    return %arg0, %c0_i32, %c0_i32_0, %c0_i32_1 : i32, i32, i32, i32
  }
  func.func @transform_3(%arg0: i32, %arg1: i32) -> (i32, i32, i32, i32) {
    %c0_i32 = arith.constant 0 : i32
    %c0_i32_0 = arith.constant 0 : i32
    %c0_i32_1 = arith.constant 0 : i32
    %c0_i32_2 = arith.constant 0 : i32
    return %arg0, %c0_i32, %c0_i32_0, %c0_i32_1 : i32, i32, i32, i32
  }
  func.func @transform_4(%arg0: i32, %arg1: i32) -> (i32, i32, i32) {
    %c0_i32 = arith.constant 0 : i32
    %c0_i32_0 = arith.constant 0 : i32
    %c0_i32_1 = arith.constant 0 : i32
    %c0_i32_2 = arith.constant 0 : i32
    return %c0_i32, %c0_i32_0, %c0_i32_1 : i32, i32, i32
  }
  func.func @transform_5(%arg0: i32, %arg1: i32) -> (i32, i32) {
    %c0_i32 = arith.constant 0 : i32
    %c0_i32_0 = arith.constant 0 : i32
    %c0_i32_1 = arith.constant 0 : i32
    return %c0_i32, %c0_i32_0 : i32, i32
  }
  func.func @transform_6(%arg0: i32, %arg1: i32) -> (i32, i32) {
    %c0_i32 = arith.constant 0 : i32
    %c0_i32_0 = arith.constant 0 : i32
    %c0_i32_1 = arith.constant 0 : i32
    return %c0_i32, %c0_i32_0 : i32, i32
  }
  func.func @transform_7(%arg0: i32, %arg1: i32) -> (i32, i32) {
    %c0_i32 = arith.constant 0 : i32
    %c0_i32_0 = arith.constant 0 : i32
    %c0_i32_1 = arith.constant 0 : i32
    return %c0_i32, %c0_i32_0 : i32, i32
  }
  func.func @transform_8(%arg0: i32, %arg1: i32) -> (i32, i32) {
    %c0_i32 = arith.constant 0 : i32
    %c0_i32_0 = arith.constant 0 : i32
    %c0_i32_1 = arith.constant 0 : i32
    return %c0_i32, %c0_i32_0 : i32, i32
  }
  func.func @transform_9(%arg0: i32, %arg1: i32) -> (i32, i32) {
    %c0_i32 = arith.constant 0 : i32
    %c0_i32_0 = arith.constant 0 : i32
    %c0_i32_1 = arith.constant 0 : i32
    return %c0_i32, %c0_i32_0 : i32, i32
  }
  func.func @transform_10(%arg0: i32, %arg1: i32) -> (i32, i32) {
    %c0_i32 = arith.constant 0 : i32
    %c0_i32_0 = arith.constant 0 : i32
    %c0_i32_1 = arith.constant 0 : i32
    return %c0_i32, %c0_i32_0 : i32, i32
  }
  func.func @transform_11(%arg0: i32, %arg1: i32) -> (i32, i32) {
    %c0_i32 = arith.constant 0 : i32
    %c0_i32_0 = arith.constant 0 : i32
    %c0_i32_1 = arith.constant 0 : i32
    return %c0_i32, %c0_i32_0 : i32, i32
  }
  func.func @transform_12(%arg0: i32, %arg1: i32) -> (i32, i32) {
    %c0_i32 = arith.constant 0 : i32
    %c0_i32_0 = arith.constant 0 : i32
    %c0_i32_1 = arith.constant 0 : i32
    return %c0_i32, %c0_i32_0 : i32, i32
  }
  func.func @transform_13(%arg0: i32, %arg1: i32) -> (i32, i32) {
    %c0_i32 = arith.constant 0 : i32
    %c0_i32_0 = arith.constant 0 : i32
    %c0_i32_1 = arith.constant 0 : i32
    return %c0_i32, %c0_i32_0 : i32, i32
  }
  func.func @transform_14(%arg0: i32, %arg1: i32) -> (i32, i32, i32) {
    %c0_i32 = arith.constant 0 : i32
    %c0_i32_0 = arith.constant 0 : i32
    return %arg0, %arg1, %c0_i32 : i32, i32, i32
  }
}

</mosaic_0001>

<bundles_post_ra>
// kernel: transformer_decoder_layer.2
= control target key start
LH: loop header
LB: loop body
LE: loop exit
PB: predicated region body
PF: predicated region fallthrough
CT: control target
= control target key end

     0   :  { %8 = vsyncpa [#allocation3], 0  ;;  %s992_s0 = inlined_call_operand.hbm [shape: f32[2,8,32], index: 0, kind: input, shape index: {}]   ;;  %s993_s1 = inlined_call_operand.hbm [shape: bf16[32,96], index: 1, kind: input, shape index: {}]   ;;  %s994_s2 = inlined_call_operand.hbm [shape: f32[1,96], index: 2, kind: input, shape index: {}]   ;;  %s995_s3 = inlined_call_operand.hbm [shape: bf16[2,8,96], index: 3, kind: output, shape index: {}]  }
   0x1   :  { %10 = vsyncpa [#allocation3 + $0x1], 0 }
   0x2   :  { %11 = vsyncpa [#allocation6], 0 }
   0x3   :  { %12 = vsyncpa [#allocation4], 0 }
   0x4   :  { %14 = vsyncpa [#allocation4 + $0x1], 0  ;;  %s740_s12 = smov 0   ;;  %s742_s13 = smov 0  }
   0x5   :  { %s744_s14 = smov 0   ;;  %s746_s15 = smov 0  }
   0x6   :  { %s748_s16 = smov 0   ;;  %s750_s17 = smov 0  }
   0x7 LB: > { %s417_s18 = sadd.s32 4294967295, %s710_s17   ;;  %s418_s19 = sadd.s32 4294967294, %s710_s17   ;;  %s710_s17 = sphi %s750_s17, %s20_s17   ;;  %s706_s16 = sphi %s748_s16, %s1017_s16   ;;  %s702_s15 = sphi %s746_s15, %s1016_s15   ;;  %s698_s14 = sphi %s744_s14, %s1015_s14   ;;  %s694_s13 = sphi %s742_s13, %s1014_s13   ;;  %s690_s12 = sphi %s740_s12, %s1013_s12  }
   0x8   : > { %p54_p0 = scmp.ne.s32.totalorder %s694_s13, %s690_s12  ;;  %p774_p1 = scmp.eq.s32.totalorder %s417_s18, 0 }
   0x9   : > { %p778_p2 = scmp.eq.s32.totalorder %s417_s18, 1  ;;  %p128_p3 = scmp.eq.s32.totalorder %s418_s19, 1 }
   0xa   : > { %s1000_s20 = scalar_select %p774_p1, 1, 0 }
   0xb   : > { %p784_p4 = por %p774_p1, %p54_p0  ;;  %p419_p5 = scmp.ge.s32.totalorder %s710_s17, 1 }
   0xc   : > { %p789_p6 = por %p128_p3, %p54_p0  ;;  %p135_p7 = scmp.lt.s32.totalorder %s710_s17, 3 }
   0xd   : > { %s1002_s22 = scalar_select %p784_p4, 1, 0 }
   0xe   : > { %s1003_s23 = scalar_select %p789_p6, 1, 0 }
   0xf   : > { %p794_p8 = pnand %p419_p5, %p135_p7  ;;  %s712_s25 = smov [#allocation5]  }
  0x10   : > { %s147_s26 = sshll.u32 %s712_s25, 4  ;;  %s713_s28 = smov [#allocation7]   ;;  %s798_s26 = int_to_ptr.vmem [resolvable:$true] %s147_s26 }
  0x11   : > { %p461_p9 = pneg %p794_p8  ;;  %s161_s29 = sshll.u32 %s713_s28, 4  ;;  %s809_s29 = int_to_ptr.vmem [resolvable:$true] %s161_s29 }
  0x12   : > { %s538_s5 = scalar_lea.hbm %s993_s1, 256 }
  0x13   : > { %p805_p11 = pnand %p461_p9, %p774_p1  ;;  %p539_p12 = scmp.ne.s32.totalorder %s993_s1, %s538_s5 }
  0x14   : > { %p545_p5 = scmp.lt.u32.totalorder %s538_s5, %s993_s1 }
  0x15   : > { %p540_p13 = pneg %p805_p11 }
  0x17   : > { %p541_p0 = pnand %p540_p13, %p539_p12 }
  0x19   : > { %p542_p3 = pneg %p541_p0 }
  0x1b   : > { %p547_p7 = pnand %p545_p5, %p542_p3 }
  0x1d   : > { %550 = shalt.err (!%p547_p7)
}
  0x1e   : > { %s551_s10 = scalar_lea.vmem %s798_s26, 256  ;;  %p559_p1 = scmp.lt.s32.totalorder %s798_s26, %s798_s26 }
  0x1f   : > { %p552_p9 = scmp.ne.s32.totalorder %s798_s26, %s551_s10  ;;  %p560_p12 = scmp.lt.s32.totalorder %s551_s10, %s551_s10 }
  0x21   : > { %p554_p10 = pnand %p552_p9, %p540_p13  ;;  %p561_p0 = por %p560_p12, %p559_p1 }
  0x23   : > { %p555_p6 = pneg %p554_p10 }
  0x25   : > { %p562_p4 = pnand %p561_p0, %p555_p6 }
  0x27   : > { %565 = shalt.err (!%p562_p4)
}
  0x28   : > { %s714_s11 = smov 64   ;;  %s715_s18 = smov 4  }
  0x29   : > { %464 = dma.hbm_to_vmem [thread:$0]  (!%p805_p11), %s993_s1, 256, %s798_s26, [#allocation6], %s714_s11, %s714_s11, %s715_s18  }
  0x2a   : > { %s566_s4 = scalar_lea.hbm %s994_s2, 16 }
  0x2b   : > { %p567_p1 = scmp.ne.s32.totalorder %s994_s2, %s566_s4  ;;  %p573_p10 = scmp.lt.u32.totalorder %s566_s4, %s994_s2 }
  0x2d   : > { %p569_p4 = pnand %p567_p1, %p540_p13 }
  0x2f   : > { %p570_p6 = pneg %p569_p4 }
  0x31   : > { %p575_p3 = pnand %p573_p10, %p570_p6 }
  0x33   : > { %578 = shalt.err (!%p575_p3)
}
  0x34   : > { %s579_s26 = scalar_lea.vmem %s809_s29, 16  ;;  %s586_s9 = scalar_lea.vmem %s809_s29, 32 }
  0x35   : > { %p580_p5 = scmp.ne.s32.totalorder %s809_s29, %s579_s26  ;;  %p587_p12 = scmp.lt.s32.totalorder %s809_s29, %s809_s29 }
  0x36   : > { %p588_p0 = scmp.lt.s32.totalorder %s586_s9, %s579_s26 }
  0x37   : > { %p582_p7 = pnand %p580_p5, %p540_p13 }
  0x38   : > { %p589_p1 = por %p588_p0, %p587_p12 }
  0x39   : > { %p583_p9 = pneg %p582_p7 }
  0x3b   : > { %p590_p4 = pnand %p589_p1, %p583_p9 }
  0x3d   : > { %593 = shalt.err (!%p590_p4)
}
  0x3e   : > { %467 = dma.hbm_to_vmem [thread:$0]  (!%p805_p11), %s994_s2, 16, %s809_s29, [#allocation6]  }
  0x3f   : > { %s32_s18 = sadd.s32 1, %s706_s16  ;;  %s41_s19 = sadd.s32 1, %s698_s14 }
  0x40   : > { %p34_p13 = scmp.ge.s32.totalorder %s32_s18, 2  ;;  %p48_p6 = scmp.ne.s32.totalorder %s698_s14, %s694_s13 }
  0x41   : > { %p49_p10 = scmp.eq.s32.totalorder %s710_s17, 0  ;;  %p478_p3 = scmp.lt.s32.totalorder %s710_s17, 2 }
  0x42   : > { %s1019_s18 = smov (%p34_p13, %s32_s18), 0  ;;  %p874_p7 = por %p778_p2, %p48_p6 }
  0x43   : > { %p50_p5 = por %p49_p10, %p48_p6  ;;  %s36_s25 = ssub.s32 %s706_s16, %s1019_s18 }
  0x44   : > { %s1006_s27 = scalar_select %p874_p7, 1, 0 }
  0x45   : > { %s172_s28 = sand.u32 1, %s698_s14   ;;  %p39_p9 = scmp.eq.s32.totalorder %s36_s25, 0 }
  0x46   : > { %s423_s29 = sshll.u32 %s172_s28, 3  ;;  %s424_s30 = sshll.u32 %s706_s16, 7 }
  0x47   : > { %s883_s4 = scalar_select %p39_p9, %s698_s14, %s41_s19  }
  0x48   : > { %s888_s7 = scalar_lea.hbm %s992_s0, %s424_s30  ;;  %s176_s21 = scalar_lea.vmem [#allocation2], %s423_s29 }
  0x49   : > { %s184_s8 = sshll.u32 %s176_s21, 4  ;;  %p892_p2 = pnand %p478_p3, %p50_p5  ;;  %s896_s8 = int_to_ptr.vmem [resolvable:$true] %s184_s8 }
  0x4a   : > { %s173_s9 = scalar_lea.sflag [#allocation3], %s172_s28  ;;  %s594_s10 = scalar_lea.hbm %s888_s7, 128 }
  0x4b   : > { %p595_p11 = scmp.ne.s32.totalorder %s888_s7, %s594_s10  ;;  %p596_p12 = pneg %p892_p2 }
  0x4c   : > { %s599_s25 = scalar_lea.hbm %s992_s0, 256  ;;  %p600_p4 = scmp.lt.u32.totalorder %s888_s7, %s992_s0 }
  0x4d   : > { %p597_p0 = pnand %p596_p12, %p595_p11  ;;  %p601_p13 = scmp.lt.u32.totalorder %s599_s25, %s594_s10 }
  0x4e   : > { %p603_p10 = scmp.lt.u32.totalorder %s594_s10, %s888_s7 }
  0x4f   : > { %p598_p1 = pneg %p597_p0  ;;  %p602_p6 = por %p601_p13, %p600_p4 }
  0x51   : > { %p604_p3 = por %p603_p10, %p602_p6 }
  0x53   : > { %p605_p5 = pnand %p604_p3, %p598_p1 }
  0x55   : > { %608 = shalt.err (!%p605_p5)
}
  0x56   : > { %s609_s28 = scalar_lea.vmem %s896_s8, 128  ;;  %s716_s5 = smov [#allocation2]  }
  0x57   : > { %p610_p9 = scmp.ne.s32.totalorder %s896_s8, %s609_s28  ;;  %s614_s6 = sshll.u32 %s716_s5, 4  ;;  %s615_s6 = int_to_ptr.vmem [resolvable:$false] %s614_s6 }
  0x58   : > { %s616_s21 = scalar_lea.vmem %s615_s6, 256  ;;  %p617_p7 = scmp.lt.s32.totalorder %s896_s8, %s615_s6 }
  0x59   : > { %p612_p11 = pnand %p610_p9, %p596_p12  ;;  %p618_p4 = scmp.lt.s32.totalorder %s616_s21, %s609_s28 }
  0x5b   : > { %p613_p0 = pneg %p612_p11  ;;  %p619_p13 = por %p618_p4, %p617_p7 }
  0x5d   : > { %p620_p6 = pnand %p619_p13, %p613_p0 }
  0x5f   : > { %623 = shalt.err (!%p620_p6)
}
  0x60   : > { %471 = dma.hbm_to_vmem [thread:$0]  (!%p892_p2), %s888_s7, 128, %s896_s8, %s173_s9  }
  0x61   : > { %193 = sbr.rel (%p794_p8) target bundleno = 347 (0x15b), region = 32  ;;  %s926_s10 = sand.u32 (!%p794_p8), 1, %s694_s13  }
  0x62   : > { %s426_s11 = sshll.u32 (!%p794_p8), %s926_s10, 3  ;;  %s196_s19 = scalar_lea.sflag (!%p794_p8), [#allocation3], %s926_s10 }
  0x63   : > { %s199_s25 = scalar_lea.vmem (!%p794_p8), [#allocation2], %s426_s11  ;;  %p1008_p7 = scmp.ne.s32.totalorder (!%p794_p8), %s1002_s22, 0 }
  0x68   : > { %677 = dma.done.wait (%p1008_p7), %s196_s19, 128  }
  0x69   : > { %679 = vsyncadd (%p1008_p7), %s196_s19, 4294967168  ;;  %p1009_p12 = scmp.ne.s32.totalorder %s1000_s20, 0 }
  0x6b   : > { %681 = dma.done.wait (%p1009_p12), [#allocation6], 272  }
  0x6c   : > { %683 = vsyncadd (%p1009_p12), [#allocation6], 4294967024  ;;  %v717_v0 = vmov 0.0   ;;  %vm718_vm0 = vmmov 0   ;;  %v536_v1 = vld [vmem:[#allocation5] sm:$0xff]   ;;  %v537_v2 = vld [vmem:[#allocation5 + $0x8] sm:$0xff]  }
  0x6d   : > { %441 = vmatprep.subr.bf16.mxu0 %v717_v0  ;;  %445 = vmatprep.mubr.msk.bf16.mxu0 %vm718_vm0, %v717_v0  ;;  %v231_v3 = vld [vmem:[%s199_s25] sm:$0xff]  ;;  %vm256_vm1 = vcmask 261120   ;;  %s429_s22 = sshll.u32 %s926_s10, 2  ;;  %s435_s20 = sshll.u32 %s702_s15, 6  ;;  %vm301_vm2 = vcmask 781312  }
  0x6e   : > { %442 = vmatpush3.bf16.msra.mxu0 %v536_v1  ;;  %v232_v4 = vpack.c.bf16 %v231_v3, %v231_v3  ;;  %v430_v5 = vld [vmem:[#allocation7] ss:$0 sm:$0xff]  ;;  %s229_s24 = scalar_lea.vmem [#allocation8], %s429_s22  ;;  %s943_s9 = scalar_lea.hbm %s995_s3, %s435_s20 }
  0x6f   : > { %443 = vmatprep.subr.bf16.mxu0 %v717_v0  ;;  %s318_s7 = sshll.u32 %s229_s24, 4  ;;  %s304_s15 = scalar_lea.sflag [#allocation4], %s926_s10  ;;  %s945_s7 = int_to_ptr.vmem [resolvable:$true] %s318_s7 }
  0x70   : > { %s624_s29 = scalar_lea.vmem %s945_s7, 64  ;;  %p1010_p2 = scmp.ne.s32.totalorder %s1006_s27, 0 }
  0x71   : > { %p625_p8 = scmp.ne.s32.totalorder %s945_s7, %s624_s29  ;;  %s719_s30 = smov [#allocation8]  }
  0x72   : > { %444 = vmatpush3.bf16.msra.mxu0 %v537_v2  ;;  %s628_s28 = sshll.u32 %s719_s30, 4  ;;  %s629_s28 = int_to_ptr.vmem [resolvable:$false] %s628_s28 }
  0x73   : > { %p626_p1 = pnand %p625_p8, %p1010_p2  ;;  %s630_s5 = scalar_lea.vmem %s629_s28, 128 }
  0x74   : > { %p631_p3 = scmp.lt.s32.totalorder %s945_s7, %s629_s28  ;;  %p632_p5 = scmp.lt.s32.totalorder %s630_s5, %s624_s29 }
  0x75   : > { %446 = vmatmul.mubr.msk.bf16.vlgmr.msra.gmra.mrb[0].mxu0 %vm256_vm1, %v232_v4  ;;  %p627_p10 = pneg %p626_p1 }
  0x76   : > { %p633_p9 = por %p632_p5, %p631_p3 }
  0x78   : > { %p634_p11 = pnand %p633_p9, %p627_p10 }
 0x148   : > { %v294_v6 = vpop.f32.mrb[0].mxu0 }
 0x149   : > { %v295_v7 = vadd.f32 %v430_v5, %v294_v6  ;;  %v447_v8 = vpop.f32.mrb[1].mxu0 }
 0x14a   : > { %v297_v9 = vpop.f32.mrb[2].mxu0 }
 0x14b   : > { %v300_v10 = vpack.c.bf16 %v295_v7, %v295_v7  ;;  %v448_v11 = vpop.f32.mrb[3].mxu0 }
 0x14d   : > { %302 = vst.msk [vmem:[%s229_s24] sm:$0xf] %vm301_vm2, %v300_v10 }
 0x14e   : > { %637 = shalt.err (!%p634_p11)
}
 0x14f   : > { %s638_s6 = scalar_lea.hbm %s943_s9, 64  ;;  %s642_s11 = scalar_lea.hbm %s995_s3, 128 }
 0x150   : > { %p639_p0 = scmp.ne.s32.totalorder %s943_s9, %s638_s6  ;;  %p643_p6 = scmp.lt.u32.totalorder %s943_s9, %s995_s3 }
 0x151   : > { %p644_p7 = scmp.lt.u32.totalorder %s642_s11, %s638_s6  ;;  %p646_p8 = scmp.lt.u32.totalorder %s638_s6, %s943_s9 }
 0x152   : > { %p640_p4 = pnand %p639_p0, %p1010_p2 }
 0x153   : > { %p645_p12 = por %p644_p7, %p643_p6 }
 0x154   : > { %p641_p13 = pneg %p640_p4 }
 0x155   : > { %p647_p1 = por %p646_p8, %p645_p12 }
 0x157   : > { %p648_p10 = pnand %p647_p1, %p641_p13 }
 0x159   : > { %651 = shalt.err (!%p648_p10)
}
 0x15a   : > { %459 = dma.vmem_to_hbm [thread:$0]  (%p1010_p2), %s945_s7, 64, %s943_s9, %s304_s15  }
 0x15b PF: > { %s330_s22 = sand.u32 1, %s690_s12   ;;  %p1011_p3 = scmp.ne.s32.totalorder %s1003_s23, 0 }
 0x15c   : > { %p1012_p5 = scmp.ge.s32.totalorder %s710_s17, 2  ;;  %s331_s20 = scalar_lea.sflag [#allocation4], %s330_s22 }
 0x15e   : > { %p473_p9 = pnand %p1012_p5, %p1011_p3 }
 0x160   : > { %685 = dma.done.wait (!%p473_p9), %s331_s20, 64  }
 0x161   : > { %687 = vsyncadd (!%p473_p9), %s331_s20, 4294967232  ;;  %s20_s17 = sadd.s32 1, %s710_s17   ;;  %s1013_s12 = smov %s694_s13 }
 0x162   : > { %p17_p11 = scmp.ge.s32.totalorder %s20_s17, 4   ;;  %s1014_s13 = smov %s698_s14 }
 0x163   : > { %s1015_s14 = smov %s883_s4  ;;  %s1016_s15 = smov %s706_s16 }
 0x164   : > { %s1017_s16 = smov %s1019_s18  ;;  %19 = sbr.rel (!%p17_p11) target bundleno = 7 (0x7), region = 85 }
 0x16b   :  { %336 = vsyncpa [#allocation3], 1 }
 0x16c   :  { %338 = vsyncpa [#allocation3 + $0x1], 1 }
 0x16d   :  { %339 = vsyncpa [#allocation6], 1 }
 0x16e   :  { %340 = vsyncpa [#allocation4], 1 }
 0x16f   :  { %342 = vsyncpa [#allocation4 + $0x1], 1 }

// kernel: transformer_decoder_layer.3
= control target key start
LH: loop header
LB: loop body
LE: loop exit
PB: predicated region body
PF: predicated region fallthrough
CT: control target
= control target key end

     0   :  { %s3533_s0 = inlined_call_operand.hbm [shape: f32[2,8,32], index: 0, kind: input, shape index: {}]   ;;  %s3534_s1 = inlined_call_operand.hbm [shape: bf16[2,4,8,8], index: 1, kind: input, shape index: {}]   ;;  %s3535_s2 = inlined_call_operand.hbm [shape: bf16[2,4,8,8], index: 2, kind: input, shape index: {}]   ;;  %s3536_s3 = inlined_call_operand.hbm [shape: bf16[2,4,8,8], index: 3, kind: input, shape index: {}]   ;;  %s3537_s4 = inlined_call_operand.hbm [shape: bf16[4,8,32], index: 4, kind: input, shape index: {}]   ;;  %s3538_s5 = inlined_call_operand.hbm [shape: f32[1,32], index: 5, kind: input, shape index: {}]   ;;  %s3539_s6 = inlined_call_operand.hbm [shape: f32[1,32], index: 6, kind: input, shape index: {}]   ;;  %s3540_s7 = inlined_call_operand.hbm [shape: f32[1,32], index: 7, kind: input, shape index: {}]   ;;  %s3541_s8 = inlined_call_operand.hbm [shape: bf16[32,32], index: 8, kind: input, shape index: {}]   ;;  %s3542_s9 = inlined_call_operand.hbm [shape: f32[1,32], index: 9, kind: input, shape index: {}]   ;;  %s3543_s10 = inlined_call_operand.hbm [shape: bf16[32,32], index: 10, kind: input, shape index: {}]   ;;  %s3544_s11 = inlined_call_operand.hbm [shape: f32[1,32], index: 11, kind: input, shape index: {}]   ;;  %s3545_s12 = inlined_call_operand.hbm [shape: f32[1,32], index: 12, kind: input, shape index: {}]   ;;  %s3546_s13 = inlined_call_operand.hbm [shape: f32[1,32], index: 13, kind: input, shape index: {}]   ;;  %s3547_s14 = inlined_call_operand.hbm [shape: f32[2,8,32], index: 14, kind: output, shape index: {}]  }
   0x1   :  { %3578 = sst [smem:[#allocation44_spill]] %s3533_s0 }
   0x2   :  { %3579 = sst [smem:[#allocation45_spill]] %s3534_s1 }
   0x3   :  { %3580 = sst [smem:[#allocation46_spill]] %s3535_s2 }
   0x4   :  { %3581 = sst [smem:[#allocation47_spill]] %s3536_s3 }
   0x5   :  { %3582 = sst [smem:[#allocation48_spill]] %s3537_s4 }
   0x6   :  { %3583 = sst [smem:[#allocation49_spill]] %s3538_s5 }
   0x7   :  { %3584 = sst [smem:[#allocation50_spill]] %s3539_s6 }
   0x8   :  { %3585 = sst [smem:[#allocation51_spill]] %s3540_s7 }
   0x9   :  { %3586 = sst [smem:[#allocation52_spill]] %s3542_s9 }
   0xa   :  { %3587 = sst [smem:[#allocation53_spill]] %s3544_s11 }
   0xb   :  { %3588 = sst [smem:[#allocation54_spill]] %s3545_s12 }
   0xc   :  { %3589 = sst [smem:[#allocation55_spill]] %s3546_s13 }
   0xd   :  { %3590 = sst [smem:[#allocation56_spill]] %s3547_s14 }
   0xe   :  { %19 = vsyncpa [#allocation3], 0 }
   0xf   :  { %21 = vsyncpa [#allocation3 + $0x1], 0 }
  0x10   :  { %22 = vsyncpa [#allocation6], 0 }
  0x11   :  { %24 = vsyncpa [#allocation6 + $0x1], 0 }
  0x12   :  { %25 = vsyncpa [#allocation9], 0 }
  0x13   :  { %27 = vsyncpa [#allocation9 + $0x1], 0 }
  0x14   :  { %28 = vsyncpa [#allocation12], 0 }
  0x15   :  { %29 = vsyncpa [#allocation15], 0 }
  0x16   :  { %30 = vsyncpa [#allocation18], 0 }
  0x17   :  { %31 = vsyncpa [#allocation21], 0 }
  0x18   :  { %32 = vsyncpa [#allocation24], 0 }
  0x19   :  { %33 = vsyncpa [#allocation4], 0 }
  0x1a   :  { %35 = vsyncpa [#allocation4 + $0x1], 0  ;;  %s2871_s29 = smov 0   ;;  %s2873_s30 = smov 0  }
  0x1b   :  { %s2875_s15 = smov 0   ;;  %s2877_s16 = smov 0  }
  0x1c   :  { %s2879_s17 = smov 0   ;;  %s2881_s18 = smov 0  }
  0x1d LB: > { %3591 = sst [smem:[#allocation36_spill]] %s2755_s29  ;;  %s2902_s19 = sadd.s32 4294967295, %s2775_s18   ;;  %s2775_s18 = sphi %s2881_s18, %s41_s18   ;;  %s2771_s17 = sphi %s2879_s17, %s3657_s17   ;;  %s2767_s16 = sphi %s2877_s16, %s3656_s16   ;;  %s2763_s15 = sphi %s2875_s15, %s3652_s15   ;;  %s2759_s30 = sphi %s2873_s30, %s3655_s30   ;;  %s2755_s29 = sphi %s2871_s29, %s3654_s29  }
  0x1e   : > { %3592 = sst [smem:[#allocation37_spill]] %s2763_s15  ;;  %p1866_p0 = scmp.ge.s32.totalorder %s2775_s18, 1 }
  0x1f   : > { %3593 = sst [smem:[#allocation38_spill]] %s2767_s16  ;;  %p3555_p1 = scmp.eq.s32.totalorder %s2902_s19, 0 }
  0x20   : > { %p404_p2 = scmp.lt.s32.totalorder %s2775_s18, 3  ;;  %s2777_s21 = smov [#allocation10]  }
  0x21   : > { %s416_s22 = sshll.u32 %s2777_s21, 4  ;;  %s2778_s24 = smov [#allocation11]   ;;  %s2911_s22 = int_to_ptr.vmem [resolvable:$true] %s416_s22 }
  0x22   : > { %p2907_p3 = pnand %p1866_p0, %p404_p2  ;;  %s430_s25 = sshll.u32 %s2778_s24, 4  ;;  %s2922_s25 = int_to_ptr.vmem [resolvable:$true] %s430_s25 }
  0x23   : > { %s2779_s26 = smov [#allocation14]   ;;  %s3597_s4 = sld [smem:[#allocation48_spill]] }
  0x24   : > { %s3594_s20 = scalar_select %p2907_p3, 1, 0 }
  0x25   : > { %p2105_p4 = pneg %p2907_p3  ;;  %s2924_s27 = sshll.u32 %s2779_s26, 4  ;;  %s453_s27 = int_to_ptr.vmem [resolvable:$true] %s2924_s27 }
  0x26   : > { %3595 = sst [smem:[#allocation39_spill]] %s3594_s20 }
  0x27   : > { %p2918_p6 = pnand %p2105_p4, %p3555_p1 }
  0x29   : > { %s3596_s23 = scalar_select %p2918_p6, 1, 0 }
  0x2a   : > { %s2261_s14 = scalar_lea.hbm %s3597_s4, 256  ;;  %p2934_p8 = pneg %p2918_p6 }
  0x2b   : > { %p2262_p7 = scmp.ne.s32.totalorder %s3597_s4, %s2261_s14  ;;  %p2268_p11 = scmp.lt.u32.totalorder %s2261_s14, %s3597_s4 }
  0x2c   : > { %s3598_s3 = scalar_select %p2934_p8, 1, 0 }
  0x2d   : > { %p2264_p9 = pnand %p2934_p8, %p2262_p7 }
  0x2f   : > { %p2265_p10 = pneg %p2264_p9 }
  0x31   : > { %p2270_p12 = pnand %p2268_p11, %p2265_p10 }
  0x33   : > { %2273 = shalt.err (!%p2270_p12)
}
  0x34   : > { %s2274_s16 = scalar_lea.vmem %s2911_s22, 256  ;;  %p2282_p4 = scmp.lt.s32.totalorder %s2911_s22, %s2911_s22 }
  0x35   : > { %p2275_p13 = scmp.ne.s32.totalorder %s2911_s22, %s2274_s16  ;;  %p2283_p5 = scmp.lt.s32.totalorder %s2274_s16, %s2274_s16 }
  0x37   : > { %p2277_p0 = pnand %p2275_p13, %p2934_p8  ;;  %p2284_p7 = por %p2283_p5, %p2282_p4 }
  0x39   : > { %p2278_p2 = pneg %p2277_p0 }
  0x3b   : > { %p2285_p9 = pnand %p2284_p7, %p2278_p2 }
  0x3d   : > { %2288 = shalt.err (!%p2285_p9)
}
  0x3e   : > { %s3557_s20 = smov 64   ;;  %s3559_s14 = smov 4  }
  0x3f   : > { %2108 = dma.hbm_to_vmem [thread:$0]  (!%p2918_p6), %s3597_s4, 256, %s2911_s22, [#allocation9], %s3557_s20, %s3557_s20, %s3559_s14  }
  0x40   : > { %s3599_s5 = sld [smem:[#allocation49_spill]] }
  0x46   : > { %s2289_s16 = scalar_lea.hbm %s3599_s5, 16 }
  0x47   : > { %p2290_p5 = scmp.ne.s32.totalorder %s3599_s5, %s2289_s16  ;;  %p2296_p12 = scmp.lt.u32.totalorder %s2289_s16, %s3599_s5 }
  0x49   : > { %p2292_p10 = pnand %p2290_p5, %p2934_p8 }
  0x4b   : > { %p2293_p11 = pneg %p2292_p10 }
  0x4d   : > { %p2298_p13 = pnand %p2296_p12, %p2293_p11 }
  0x4f   : > { %2301 = shalt.err (!%p2298_p13)
}
  0x50   : > { %s2302_s22 = scalar_lea.vmem %s2922_s25, 16  ;;  %s2309_s0 = scalar_lea.vmem %s2922_s25, 32 }
  0x51   : > { %p2303_p0 = scmp.ne.s32.totalorder %s2922_s25, %s2302_s22  ;;  %p2310_p7 = scmp.lt.s32.totalorder %s2922_s25, %s2922_s25 }
  0x52   : > { %p2311_p9 = scmp.lt.s32.totalorder %s2309_s0, %s2302_s22 }
  0x53   : > { %p2305_p2 = pnand %p2303_p0, %p2934_p8 }
  0x54   : > { %p2312_p5 = por %p2311_p9, %p2310_p7 }
  0x55   : > { %p2306_p4 = pneg %p2305_p2 }
  0x57   : > { %p2313_p10 = pnand %p2312_p5, %p2306_p4 }
  0x59   : > { %2316 = shalt.err (!%p2313_p10)
}
  0x5a   : > { %2111 = dma.hbm_to_vmem [thread:$0]  (!%p2918_p6), %s3599_s5, 16, %s2922_s25, [#allocation12]  }
  0x5b   : > { %s3600_s7 = sld [smem:[#allocation51_spill]] }
  0x61   : > { %s2317_s21 = scalar_lea.hbm %s3600_s7, 16 }
  0x62   : > { %p2318_p11 = scmp.ne.s32.totalorder %s3600_s7, %s2317_s21  ;;  %p2324_p0 = scmp.lt.u32.totalorder %s2317_s21, %s3600_s7 }
  0x64   : > { %p2320_p12 = pnand %p2318_p11, %p2934_p8 }
  0x66   : > { %p2321_p13 = pneg %p2320_p12 }
  0x68   : > { %p2326_p2 = pnand %p2324_p0, %p2321_p13 }
  0x6a   : > { %2329 = shalt.err (!%p2326_p2)
}
  0x6b   : > { %s2330_s0 = scalar_lea.vmem %s453_s27, 16  ;;  %s2337_s25 = scalar_lea.vmem %s453_s27, 32 }
  0x6c   : > { %p2331_p4 = scmp.ne.s32.totalorder %s453_s27, %s2330_s0  ;;  %p2338_p5 = scmp.lt.s32.totalorder %s453_s27, %s453_s27 }
  0x6d   : > { %p2339_p10 = scmp.lt.s32.totalorder %s2337_s25, %s2330_s0 }
  0x6e   : > { %p2333_p7 = pnand %p2331_p4, %p2934_p8 }
  0x6f   : > { %p2340_p1 = por %p2339_p10, %p2338_p5 }
  0x70   : > { %p2334_p9 = pneg %p2333_p7 }
  0x72   : > { %p2341_p3 = pnand %p2340_p1, %p2334_p9 }
  0x74   : > { %2344 = shalt.err (!%p2341_p3)
}
  0x75   : > { %2117 = dma.hbm_to_vmem [thread:$0]  (!%p2918_p6), %s3600_s7, 16, %s453_s27, [#allocation15]  }
  0x76   : > { %s2782_s13 = smov [#allocation17]   ;;  %s2783_s21 = smov [#allocation20]  }
  0x77   : > { %s476_s28 = sshll.u32 %s2782_s13, 4  ;;  %s500_s24 = sshll.u32 %s2783_s21, 4  ;;  %s477_s28 = int_to_ptr.vmem [resolvable:$true] %s476_s28  ;;  %s501_s24 = int_to_ptr.vmem [resolvable:$true] %s500_s24 }
  0x78   : > { %s3601_s9 = sld [smem:[#allocation52_spill]] }
  0x7e   : > { %s2345_s22 = scalar_lea.hbm %s3601_s9, 16 }
  0x7f   : > { %p2346_p1 = scmp.ne.s32.totalorder %s3601_s9, %s2345_s22  ;;  %p2352_p12 = scmp.lt.u32.totalorder %s2345_s22, %s3601_s9 }
  0x81   : > { %p2348_p3 = pnand %p2346_p1, %p2934_p8 }
  0x83   : > { %p2349_p11 = pneg %p2348_p3 }
  0x85   : > { %p2354_p13 = pnand %p2352_p12, %p2349_p11 }
  0x87   : > { %2357 = shalt.err (!%p2354_p13)
}
  0x88   : > { %s2358_s27 = scalar_lea.vmem %s477_s28, 16  ;;  %s2365_s12 = scalar_lea.vmem %s477_s28, 32 }
  0x89   : > { %p2359_p0 = scmp.ne.s32.totalorder %s477_s28, %s2358_s27  ;;  %p2366_p7 = scmp.lt.s32.totalorder %s477_s28, %s477_s28 }
  0x8a   : > { %p2367_p9 = scmp.lt.s32.totalorder %s2365_s12, %s2358_s27 }
  0x8b   : > { %p2361_p2 = pnand %p2359_p0, %p2934_p8 }
  0x8c   : > { %p2368_p5 = por %p2367_p9, %p2366_p7 }
  0x8d   : > { %p2362_p4 = pneg %p2361_p2 }
  0x8f   : > { %p2369_p10 = pnand %p2368_p5, %p2362_p4 }
  0x91   : > { %2372 = shalt.err (!%p2369_p10)
}
  0x92   : > { %2123 = dma.hbm_to_vmem [thread:$0]  (!%p2918_p6), %s3601_s9, 16, %s477_s28, [#allocation18]  }
  0x93   : > { %s3602_s11 = sld [smem:[#allocation53_spill]] }
  0x99   : > { %s2373_s16 = scalar_lea.hbm %s3602_s11, 16 }
  0x9a   : > { %p2374_p1 = scmp.ne.s32.totalorder %s3602_s11, %s2373_s16  ;;  %p2380_p12 = scmp.lt.u32.totalorder %s2373_s16, %s3602_s11 }
  0x9c   : > { %p2376_p3 = pnand %p2374_p1, %p2934_p8 }
  0x9e   : > { %p2377_p11 = pneg %p2376_p3 }
  0xa0   : > { %p2382_p13 = pnand %p2380_p12, %p2377_p11 }
  0xa2   : > { %2385 = shalt.err (!%p2382_p13)
}
  0xa3   : > { %s2386_s27 = scalar_lea.vmem %s501_s24, 16  ;;  %s2393_s28 = scalar_lea.vmem %s501_s24, 32 }
  0xa4   : > { %p2387_p0 = scmp.ne.s32.totalorder %s501_s24, %s2386_s27  ;;  %p2394_p7 = scmp.lt.s32.totalorder %s501_s24, %s501_s24 }
  0xa5   : > { %p2395_p9 = scmp.lt.s32.totalorder %s2393_s28, %s2386_s27 }
  0xa6   : > { %p2389_p2 = pnand %p2387_p0, %p2934_p8 }
  0xa7   : > { %p2396_p5 = por %p2395_p9, %p2394_p7 }
  0xa8   : > { %p2390_p4 = pneg %p2389_p2 }
  0xaa   : > { %p2397_p10 = pnand %p2396_p5, %p2390_p4 }
  0xac   : > { %2400 = shalt.err (!%p2397_p10)
}
  0xad   : > { %2129 = dma.hbm_to_vmem [thread:$0]  (!%p2918_p6), %s3602_s11, 16, %s501_s24, [#allocation21]  }
  0xae   : > { %s1865_s21 = sadd.s32 4294967294, %s2775_s18   ;;  %s53_s20 = sadd.s32 1, %s2771_s17 }
  0xaf   : > { %s62_s26 = sadd.s32 1, %s2763_s15  ;;  %p55_p1 = scmp.ge.s32.totalorder %s53_s20, 2 }
  0xb0   : > { %p69_p3 = scmp.ne.s32.totalorder %s2763_s15, %s2759_s30  ;;  %p70_p11 = scmp.eq.s32.totalorder %s2775_s18, 0 }
  0xb1   : > { %p75_p12 = scmp.ne.s32.totalorder %s2759_s30, %s2755_s29  ;;  %s3659_s20 = smov (%p55_p1, %s53_s20), 0 }
  0xb2   : > { %3603 = sst [smem:[#allocation40_spill]] %s3659_s20  ;;  %p71_p13 = por %p70_p11, %p69_p3 }
  0xb3   : > { %p3604_p0 = scmp.eq.s32.totalorder %s2902_s19, 0  ;;  %s57_s24 = ssub.s32 %s2771_s17, %s3659_s20 }
  0xb4   : > { %p391_p4 = scmp.eq.s32.totalorder %s2902_s19, 1  ;;  %p60_p7 = scmp.eq.s32.totalorder %s57_s24, 0 }
  0xb5   : > { %p3049_p2 = por %p3604_p0, %p75_p12  ;;  %p397_p9 = scmp.eq.s32.totalorder %s1865_s21, 1 }
  0xb6   : > { %p3056_p5 = por %p391_p4, %p69_p3  ;;  %p2163_p10 = scmp.lt.s32.totalorder %s2775_s18, 2 }
  0xb7   : > { %s3605_s16 = scalar_select %p3049_p2, 1, 0 }
  0xb8   : > { %s3606_s22 = scalar_select %p3056_p5, 1, 0 }
  0xb9   : > { %s3062_s0 = scalar_select %p60_p7, %s2763_s15, %s62_s26  }
  0xba   : > { %3607 = sst [smem:[#allocation41_spill]] %s3606_s22  ;;  %p3064_p1 = por %p397_p9, %p75_p12 }
  0xbb   : > { %3608 = sst [smem:[#allocation42_spill]] %s3062_s0  ;;  %s3069_s2 = sand.u32 1, %s2763_s15  }
  0xbc   : > { %s3609_s25 = scalar_select %p3064_p1, 1, 0 }
  0xbd   : > { %p3071_p11 = pnand %p2163_p10, %p71_p13  ;;  %s3563_s28 = sand.u32 1, %s2775_s18  }
  0xbe   : > { %3610 = sst [smem:[#allocation43_spill]] %s3609_s25  ;;  %s3077_s12 = sshll.u32 %s3069_s2, 4 }
  0xbf   : > { %s3611_s27 = scalar_select %p3071_p11, 1, 0 }
  0xc0   : > { %s3080_s13 = sshll.u32 %s2771_s17, 8  ;;  %s556_s21 = scalar_lea.vmem [#allocation5], %s3077_s12 }
  0xc1   : > { %s564_s26 = sshll.u32 %s556_s21, 4  ;;  %s3612_s1 = sld [smem:[#allocation45_spill]]  ;;  %s3089_s26 = int_to_ptr.vmem [resolvable:$true] %s564_s26 }
  0xc2   : > { %s3093_s5 = scalar_lea.sflag [#allocation6], %s3563_s28  ;;  %p3099_p12 = pneg %p3071_p11 }
  0xc4   : > { %s3613_s9 = scalar_select %p3099_p12, 1, 0 }
  0xc7   : > { %s3087_s4 = scalar_lea.hbm %s3612_s1, %s3080_s13  ;;  %s2406_s24 = scalar_lea.hbm %s3612_s1, 512 }
  0xc8   : > { %s2401_s7 = scalar_lea.hbm %s3087_s4, 256  ;;  %p2407_p4 = scmp.lt.u32.totalorder %s3087_s4, %s3612_s1 }
  0xc9   : > { %p2402_p3 = scmp.ne.s32.totalorder %s3087_s4, %s2401_s7  ;;  %p2408_p7 = scmp.lt.u32.totalorder %s2406_s24, %s2401_s7 }
  0xca   : > { %p2410_p10 = scmp.lt.u32.totalorder %s2401_s7, %s3087_s4 }
  0xcb   : > { %p2404_p13 = pnand %p3099_p12, %p2402_p3  ;;  %p2409_p9 = por %p2408_p7, %p2407_p4 }
  0xcd   : > { %p2405_p0 = pneg %p2404_p13  ;;  %p2411_p1 = por %p2410_p10, %p2409_p9 }
  0xcf   : > { %p2412_p5 = pnand %p2411_p1, %p2405_p0 }
  0xd1   : > { %2415 = shalt.err (!%p2412_p5)
}
  0xd2   : > { %s2416_s28 = scalar_lea.vmem %s3089_s26, 256  ;;  %s2784_s14 = smov [#allocation5]  }
  0xd3   : > { %p2417_p3 = scmp.ne.s32.totalorder %s3089_s26, %s2416_s28  ;;  %s2421_s21 = sshll.u32 %s2784_s14, 4  ;;  %s2422_s21 = int_to_ptr.vmem [resolvable:$false] %s2421_s21 }
  0xd4   : > { %s2423_s11 = scalar_lea.vmem %s2422_s21, 512  ;;  %p2424_p6 = scmp.lt.s32.totalorder %s3089_s26, %s2422_s21 }
  0xd5   : > { %p2419_p13 = pnand %p2417_p3, %p3099_p12  ;;  %p2425_p8 = scmp.lt.s32.totalorder %s2423_s11, %s2416_s28 }
  0xd7   : > { %p2420_p2 = pneg %p2419_p13  ;;  %p2426_p4 = por %p2425_p8, %p2424_p6 }
  0xd9   : > { %p2427_p7 = pnand %p2426_p4, %p2420_p2 }
  0xdb   : > { %2430 = shalt.err (!%p2427_p7)
}
  0xdc   : > { %s3614_s7 = smov 4   ;;  %s3615_s20 = smov 64  }
  0xdd   : > { %2142 = dma.hbm_to_vmem [thread:$0]  (!%p3071_p11), %s3087_s4, 256, %s3089_s26, %s3093_s5, %s3615_s20, %s3615_s20, %s3614_s7  }
  0xde   : > { %s2785_s24 = smov [#allocation13]   ;;  %s2786_s14 = smov [#allocation16]  }
  0xdf   : > { %s441_s1 = sshll.u32 %s2785_s24, 4  ;;  %s462_s0 = sshll.u32 %s2786_s14, 4  ;;  %s442_s1 = int_to_ptr.vmem [resolvable:$true] %s441_s1  ;;  %s463_s0 = int_to_ptr.vmem [resolvable:$true] %s462_s0 }
  0xe0   : > { %s3616_s6 = sld [smem:[#allocation50_spill]]  ;;  %p3617_p8 = scmp.ne.s32.totalorder %s3598_s3, 0 }
  0xe6   : > { %s2431_s11 = scalar_lea.hbm %s3616_s6, 16 }
  0xe7   : > { %p2432_p6 = scmp.ne.s32.totalorder %s3616_s6, %s2431_s11  ;;  %p2438_p1 = scmp.lt.u32.totalorder %s2431_s11, %s3616_s6 }
  0xe9   : > { %p2434_p2 = pnand %p2432_p6, %p3617_p8 }
  0xeb   : > { %p2435_p5 = pneg %p2434_p2 }
  0xed   : > { %p2440_p0 = pnand %p2438_p1, %p2435_p5 }
  0xef   : > { %2443 = shalt.err (!%p2440_p0)
}
  0xf0   : > { %s2444_s4 = scalar_lea.vmem %s442_s1, 16  ;;  %s2451_s26 = scalar_lea.vmem %s442_s1, 32 }
  0xf1   : > { %p2445_p9 = scmp.ne.s32.totalorder %s442_s1, %s2444_s4  ;;  %p2452_p13 = scmp.lt.s32.totalorder %s442_s1, %s442_s1 }
  0xf2   : > { %p2453_p4 = scmp.lt.s32.totalorder %s2451_s26, %s2444_s4 }
  0xf3   : > { %p2447_p10 = pnand %p2445_p9, %p3617_p8 }
  0xf4   : > { %p2454_p7 = por %p2453_p4, %p2452_p13 }
  0xf5   : > { %p2448_p3 = pneg %p2447_p10 }
  0xf7   : > { %p2455_p11 = pnand %p2454_p7, %p2448_p3 }
  0xf9   : > { %2458 = shalt.err (!%p2455_p11)
}
  0xfa   : > { %p3618_p6 = scmp.ne.s32.totalorder %s3596_s23, 0  ;;  %s2459_s24 = scalar_lea.hbm %s3541_s8, 256 }
  0xfb   : > { %p2460_p2 = scmp.ne.s32.totalorder %s3541_s8, %s2459_s24  ;;  %p2466_p11 = scmp.lt.u32.totalorder %s2459_s24, %s3541_s8 }
  0xfc   : > { %2114 = dma.hbm_to_vmem [thread:$0]  (!%p3618_p6), %s3616_s6, 16, %s442_s1, [#allocation12]  }
  0xfd   : > { %p2462_p5 = pnand %p2460_p2, %p3617_p8 }
  0xff   : > { %p2463_p1 = pneg %p2462_p5 }
 0x101   : > { %p2468_p0 = pnand %p2466_p11, %p2463_p1 }
 0x103   : > { %2471 = shalt.err (!%p2468_p0)
}
 0x104   : > { %s2472_s4 = scalar_lea.vmem %s463_s0, 256  ;;  %p2480_p13 = scmp.lt.s32.totalorder %s463_s0, %s463_s0 }
 0x105   : > { %p2473_p9 = scmp.ne.s32.totalorder %s463_s0, %s2472_s4  ;;  %p2481_p4 = scmp.lt.s32.totalorder %s2472_s4, %s2472_s4 }
 0x107   : > { %p2475_p10 = pnand %p2473_p9, %p3617_p8  ;;  %p2482_p7 = por %p2481_p4, %p2480_p13 }
 0x109   : > { %p2476_p3 = pneg %p2475_p10 }
 0x10b   : > { %p2483_p12 = pnand %p2482_p7, %p2476_p3 }
 0x10d   : > { %2486 = shalt.err (!%p2483_p12)
}
 0x10e   : > { %2120 = dma.hbm_to_vmem [thread:$0]  (!%p3618_p6), %s3541_s8, 256, %s463_s0, [#allocation15], %s3615_s20, %s3615_s20, %s3614_s7  }
 0x10f   : > { %s2787_s15 = smov [#allocation19]   ;;  %s2788_s29 = smov [#allocation22]  }
 0x110   : > { %s486_s25 = sshll.u32 %s2787_s15, 4  ;;  %s511_s22 = sshll.u32 %s2788_s29, 4  ;;  %s487_s25 = int_to_ptr.vmem [resolvable:$true] %s486_s25  ;;  %s512_s22 = int_to_ptr.vmem [resolvable:$true] %s511_s22 }
 0x111   : > { %s2487_s21 = scalar_lea.hbm %s3543_s10, 256 }
 0x112   : > { %p2488_p12 = scmp.ne.s32.totalorder %s3543_s10, %s2487_s21  ;;  %p2494_p1 = scmp.lt.u32.totalorder %s2487_s21, %s3543_s10 }
 0x114   : > { %p2490_p2 = pnand %p2488_p12, %p3617_p8 }
 0x116   : > { %p2491_p5 = pneg %p2490_p2 }
 0x118   : > { %p2496_p11 = pnand %p2494_p1, %p2491_p5 }
 0x11a   : > { %2499 = shalt.err (!%p2496_p11)
}
 0x11b   : > { %s2500_s0 = scalar_lea.vmem %s487_s25, 256  ;;  %p2508_p3 = scmp.lt.s32.totalorder %s487_s25, %s487_s25 }
 0x11c   : > { %p2501_p0 = scmp.ne.s32.totalorder %s487_s25, %s2500_s0  ;;  %p2509_p13 = scmp.lt.s32.totalorder %s2500_s0, %s2500_s0 }
 0x11e   : > { %p2503_p9 = pnand %p2501_p0, %p3617_p8  ;;  %p2510_p4 = por %p2509_p13, %p2508_p3 }
 0x120   : > { %p2504_p10 = pneg %p2503_p9 }
 0x122   : > { %p2511_p7 = pnand %p2510_p4, %p2504_p10 }
 0x124   : > { %2514 = shalt.err (!%p2511_p7)
}
 0x125   : > { %2126 = dma.hbm_to_vmem [thread:$0]  (!%p3618_p6), %s3543_s10, 256, %s487_s25, [#allocation18], %s3615_s20, %s3615_s20, %s3614_s7  }
 0x126   : > { %s3619_s14 = sld [smem:[#allocation54_spill]] }
 0x12c   : > { %s2515_s21 = scalar_lea.hbm %s3619_s14, 16 }
 0x12d   : > { %p2516_p12 = scmp.ne.s32.totalorder %s3619_s14, %s2515_s21  ;;  %p2522_p1 = scmp.lt.u32.totalorder %s2515_s21, %s3619_s14 }
 0x12f   : > { %p2518_p2 = pnand %p2516_p12, %p3617_p8 }
 0x131   : > { %p2519_p5 = pneg %p2518_p2 }
 0x133   : > { %p2524_p11 = pnand %p2522_p1, %p2519_p5 }
 0x135   : > { %2527 = shalt.err (!%p2524_p11)
}
 0x136   : > { %s2528_s0 = scalar_lea.vmem %s512_s22, 16  ;;  %s2535_s25 = scalar_lea.vmem %s512_s22, 32 }
 0x137   : > { %p2529_p0 = scmp.ne.s32.totalorder %s512_s22, %s2528_s0  ;;  %p2536_p3 = scmp.lt.s32.totalorder %s512_s22, %s512_s22 }
 0x138   : > { %p2537_p13 = scmp.lt.s32.totalorder %s2535_s25, %s2528_s0 }
 0x139   : > { %p2531_p9 = pnand %p2529_p0, %p3617_p8 }
 0x13a   : > { %p2538_p4 = por %p2537_p13, %p2536_p3 }
 0x13b   : > { %p2532_p10 = pneg %p2531_p9 }
 0x13d   : > { %p2539_p7 = pnand %p2538_p4, %p2532_p10 }
 0x13f   : > { %2542 = shalt.err (!%p2539_p7)
}
 0x140   : > { %2132 = dma.hbm_to_vmem [thread:$0]  (!%p3618_p6), %s3619_s14, 16, %s512_s22, [#allocation21]  }
 0x141   : > { %s2789_s29 = smov [#allocation23]   ;;  %s1878_s21 = sshll.u32 %s3069_s2, 3 }
 0x142   : > { %s522_s24 = sshll.u32 %s2789_s29, 4  ;;  %s3620_s4 = sld [smem:[#allocation55_spill]]  ;;  %s523_s24 = int_to_ptr.vmem [resolvable:$true] %s522_s24 }
 0x148   : > { %s2543_s1 = scalar_lea.hbm %s3620_s4, 16 }
 0x149   : > { %p2544_p12 = scmp.ne.s32.totalorder %s3620_s4, %s2543_s1  ;;  %p2550_p1 = scmp.lt.u32.totalorder %s2543_s1, %s3620_s4 }
 0x14b   : > { %p2546_p2 = pnand %p2544_p12, %p3617_p8 }
 0x14d   : > { %p2547_p5 = pneg %p2546_p2 }
 0x14f   : > { %p2552_p11 = pnand %p2550_p1, %p2547_p5 }
 0x151   : > { %2555 = shalt.err (!%p2552_p11)
}
 0x152   : > { %s2556_s22 = scalar_lea.vmem %s523_s24, 16  ;;  %s2563_s15 = scalar_lea.vmem %s523_s24, 32 }
 0x153   : > { %p2557_p0 = scmp.ne.s32.totalorder %s523_s24, %s2556_s22  ;;  %p2564_p3 = scmp.lt.s32.totalorder %s523_s24, %s523_s24 }
 0x154   : > { %p2565_p13 = scmp.lt.s32.totalorder %s2563_s15, %s2556_s22 }
 0x155   : > { %p2559_p9 = pnand %p2557_p0, %p3617_p8 }
 0x156   : > { %p2566_p4 = por %p2565_p13, %p2564_p3 }
 0x157   : > { %p2560_p10 = pneg %p2559_p9 }
 0x159   : > { %p2567_p7 = pnand %p2566_p4, %p2560_p10 }
 0x15b   : > { %2570 = shalt.err (!%p2567_p7)
}
 0x15c   : > { %2135 = dma.hbm_to_vmem [thread:$0]  (!%p3618_p6), %s3620_s4, 16, %s523_s24, [#allocation24]  }
 0x15d   : > { %s1879_s6 = sshll.u32 %s2771_s17, 7  ;;  %s3621_s1 = sld [smem:[#allocation44_spill]] }
 0x15e   : > { %s537_s25 = scalar_lea.vmem [#allocation2], %s1878_s21  ;;  %s534_s23 = scalar_lea.sflag [#allocation3], %s3069_s2 }
 0x15f   : > { %s545_s26 = sshll.u32 %s537_s25, 4  ;;  %p3622_p12 = scmp.ne.s32.totalorder %s3613_s9, 0  ;;  %s546_s26 = int_to_ptr.vmem [resolvable:$true] %s545_s26 }
 0x163   : > { %s3227_s0 = scalar_lea.hbm %s3621_s1, %s1879_s6  ;;  %s2576_s29 = scalar_lea.hbm %s3621_s1, 256 }
 0x164   : > { %s2571_s22 = scalar_lea.hbm %s3227_s0, 128  ;;  %p2577_p6 = scmp.lt.u32.totalorder %s3227_s0, %s3621_s1 }
 0x165   : > { %p2572_p8 = scmp.ne.s32.totalorder %s3227_s0, %s2571_s22  ;;  %p2578_p1 = scmp.lt.u32.totalorder %s2576_s29, %s2571_s22 }
 0x166   : > { %p2580_p0 = scmp.lt.u32.totalorder %s2571_s22, %s3227_s0 }
 0x167   : > { %p2574_p2 = pnand %p2572_p8, %p3622_p12  ;;  %p2579_p11 = por %p2578_p1, %p2577_p6 }
 0x169   : > { %p2575_p5 = pneg %p2574_p2  ;;  %p2581_p9 = por %p2580_p0, %p2579_p11 }
 0x16b   : > { %p2582_p10 = pnand %p2581_p9, %p2575_p5 }
 0x16d   : > { %2585 = shalt.err (!%p2582_p10)
}
 0x16e   : > { %s2586_s2 = scalar_lea.vmem %s546_s26, 128  ;;  %s2790_s21 = smov [#allocation2]  }
 0x16f   : > { %p2587_p3 = scmp.ne.s32.totalorder %s546_s26, %s2586_s2  ;;  %s2591_s11 = sshll.u32 %s2790_s21, 4  ;;  %s2592_s11 = int_to_ptr.vmem [resolvable:$false] %s2591_s11 }
 0x170   : > { %s2593_s3 = scalar_lea.vmem %s2592_s11, 256  ;;  %p2594_p7 = scmp.lt.s32.totalorder %s546_s26, %s2592_s11 }
 0x171   : > { %p2589_p13 = pnand %p2587_p3, %p3622_p12  ;;  %p2595_p8 = scmp.lt.s32.totalorder %s2593_s3, %s2586_s2 }
 0x173   : > { %p2590_p4 = pneg %p2589_p13  ;;  %p2596_p2 = por %p2595_p8, %p2594_p7 }
 0x175   : > { %p2597_p1 = pnand %p2596_p2, %p2590_p4 }
 0x177   : > { %2600 = shalt.err (!%p2597_p1)
}
 0x178   : > { %p3623_p6 = scmp.ne.s32.totalorder %s3611_s27, 0  ;;  %s3624_s24 = sld [smem:[#allocation46_spill]] }
 0x179   : > { %s578_s29 = scalar_lea.vmem [#allocation7], %s3077_s12 }
 0x17a   : > { %2139 = dma.hbm_to_vmem [thread:$0]  (!%p3623_p6), %s3227_s0, 128, %s546_s26, %s534_s23  }
 0x17b   : > { %s585_s28 = sshll.u32 %s578_s29, 4  ;;  %s3254_s28 = int_to_ptr.vmem [resolvable:$true] %s585_s28 }
 0x17e   : > { %s3251_s15 = scalar_lea.hbm %s3624_s24, %s3080_s13  ;;  %s2606_s26 = scalar_lea.hbm %s3624_s24, 512 }
 0x17f   : > { %s2601_s6 = scalar_lea.hbm %s3251_s15, 256  ;;  %p2607_p9 = scmp.lt.u32.totalorder %s3251_s15, %s3624_s24 }
 0x180   : > { %p2602_p5 = scmp.ne.s32.totalorder %s3251_s15, %s2601_s6  ;;  %p2608_p10 = scmp.lt.u32.totalorder %s2606_s26, %s2601_s6 }
 0x181   : > { %p2610_p13 = scmp.lt.u32.totalorder %s2601_s6, %s3251_s15 }
 0x182   : > { %p2604_p11 = pnand %p2602_p5, %p3622_p12  ;;  %p2609_p3 = por %p2608_p10, %p2607_p9 }
 0x184   : > { %p2605_p0 = pneg %p2604_p11  ;;  %p2611_p4 = por %p2610_p13, %p2609_p3 }
 0x186   : > { %p2612_p7 = pnand %p2611_p4, %p2605_p0 }
 0x188   : > { %2615 = shalt.err (!%p2612_p7)
}
 0x189   : > { %s2616_s11 = scalar_lea.vmem %s3254_s28, 256  ;;  %s2791_s3 = smov [#allocation7]  }
 0x18a   : > { %p2617_p8 = scmp.ne.s32.totalorder %s3254_s28, %s2616_s11  ;;  %s2621_s25 = sshll.u32 %s2791_s3, 4  ;;  %s2622_s25 = int_to_ptr.vmem [resolvable:$false] %s2621_s25 }
 0x18b   : > { %s2623_s22 = scalar_lea.vmem %s2622_s25, 512  ;;  %p2624_p5 = scmp.lt.s32.totalorder %s3254_s28, %s2622_s25 }
 0x18c   : > { %p2619_p2 = pnand %p2617_p8, %p3622_p12  ;;  %p2625_p11 = scmp.lt.s32.totalorder %s2623_s22, %s2616_s11 }
 0x18e   : > { %p2620_p1 = pneg %p2619_p2  ;;  %p2626_p9 = por %p2625_p11, %p2624_p5 }
 0x190   : > { %p2627_p10 = pnand %p2626_p9, %p2620_p1 }
 0x192   : > { %2630 = shalt.err (!%p2627_p10)
}
 0x193   : > { %2145 = dma.hbm_to_vmem [thread:$0]  (!%p3623_p6), %s3251_s15, 256, %s3254_s28, %s3093_s5, %s3615_s20, %s3615_s20, %s3614_s7  }
 0x194   : > { %s3625_s2 = sld [smem:[#allocation47_spill]]  ;;  %s599_s26 = scalar_lea.vmem [#allocation8], %s3077_s12 }
 0x195   : > { %s606_s23 = sshll.u32 %s599_s26, 4  ;;  %s3626_s21 = sand.u32 1, %s2775_s18   ;;  %s3288_s23 = int_to_ptr.vmem [resolvable:$true] %s606_s23 }
 0x196   : > { %s3292_s11 = scalar_lea.sflag [#allocation9], %s3626_s21 }
 0x19a   : > { %s3285_s0 = scalar_lea.hbm %s3625_s2, %s3080_s13  ;;  %s2636_s13 = scalar_lea.hbm %s3625_s2, 512 }
 0x19b   : > { %s2631_s3 = scalar_lea.hbm %s3285_s0, 256  ;;  %p2637_p4 = scmp.lt.u32.totalorder %s3285_s0, %s3625_s2 }
 0x19c   : > { %p2632_p0 = scmp.ne.s32.totalorder %s3285_s0, %s2631_s3  ;;  %p2638_p7 = scmp.lt.u32.totalorder %s2636_s13, %s2631_s3 }
 0x19d   : > { %p2640_p2 = scmp.lt.u32.totalorder %s2631_s3, %s3285_s0 }
 0x19e   : > { %p2634_p3 = pnand %p2632_p0, %p3622_p12  ;;  %p2639_p8 = por %p2638_p7, %p2637_p4 }
 0x1a0   : > { %p2635_p13 = pneg %p2634_p3  ;;  %p2641_p1 = por %p2640_p2, %p2639_p8 }
 0x1a2   : > { %p2642_p5 = pnand %p2641_p1, %p2635_p13 }
 0x1a4   : > { %2645 = shalt.err (!%p2642_p5)
}
 0x1a5   : > { %s2646_s12 = scalar_lea.vmem %s3288_s23, 256  ;;  %s2792_s22 = smov [#allocation8]  }
 0x1a6   : > { %p2647_p11 = scmp.ne.s32.totalorder %s3288_s23, %s2646_s12  ;;  %s2651_s29 = sshll.u32 %s2792_s22, 4  ;;  %s2652_s29 = int_to_ptr.vmem [resolvable:$false] %s2651_s29 }
 0x1a7   : > { %s2653_s6 = scalar_lea.vmem %s2652_s29, 512  ;;  %p2654_p0 = scmp.lt.s32.totalorder %s3288_s23, %s2652_s29 }
 0x1a8   : > { %p2649_p9 = pnand %p2647_p11, %p3622_p12  ;;  %p2655_p3 = scmp.lt.s32.totalorder %s2653_s6, %s2646_s12 }
 0x1aa   : > { %p2650_p10 = pneg %p2649_p9  ;;  %p2656_p4 = por %p2655_p3, %p2654_p0 }
 0x1ac   : > { %p2657_p7 = pnand %p2656_p4, %p2650_p10 }
 0x1ae   : > { %2660 = shalt.err (!%p2657_p7)
}
 0x1af   : > { %2148 = dma.hbm_to_vmem [thread:$0]  (!%p3623_p6), %s3285_s0, 256, %s3288_s23, %s3292_s11, %s3615_s20, %s3615_s20, %s3614_s7  }
 0x1b0   : > { %s3627_s9 = sld [smem:[#allocation39_spill]] }
 0x1b6   : > { %p3628_p12 = scmp.ne.s32.totalorder %s3627_s9, 0 }
 0x1b7   : > { %s3322_s26 = sand.u32 (!%p3628_p12), 1, %s2759_s30   ;;  %p3629_p13 = scmp.ne.s32.totalorder (!%p3628_p12), %s3605_s16, 0 }
 0x1b8   : > { %618 = sbr.rel (%p3628_p12) target bundleno = 2535 (0x9e7), region = 76  ;;  %s1890_s21 = sshll.u32 (!%p3628_p12), %s3322_s26, 3 }
 0x1b9   : > { %s621_s3 = scalar_lea.sflag (!%p3628_p12), [#allocation3], %s3322_s26  ;;  %s3328_s27 = scalar_lea.vmem (!%p3628_p12), [#allocation2], %s1890_s21 }
 0x1bf   : > { %2714 = dma.done.wait (%p3629_p13), %s621_s3, 128  }
 0x1c0   : > { %2716 = vsyncadd (%p3629_p13), %s621_s3, 4294967168  ;;  %s629_s7 = sand.u32 1, %s2902_s19   ;;  %s1891_s20 = sshll.u32 %s3322_s26, 4 }
 0x1c1   : > { %s630_s0 = scalar_lea.sflag [#allocation6], %s629_s7  ;;  %s3336_s23 = scalar_lea.vmem [#allocation5], %s1891_s20 }
 0x1c2   : > { %2718 = dma.done.wait (%p3629_p13), %s630_s0, 512  }
 0x1c3   : > { %2720 = vsyncadd (%p3629_p13), %s630_s0, 4294966784  ;;  %s3342_s11 = scalar_lea.vmem [#allocation7], %s1891_s20  ;;  %s648_s5 = scalar_lea.sflag [#allocation9], %s629_s7 }
 0x1c4   : > { %s3344_s15 = scalar_lea.vmem [#allocation8], %s1891_s20 }
 0x1c5   : > { %2722 = dma.done.wait (%p3629_p13), %s648_s5, 256  }
 0x1c6   : > { %2724 = vsyncadd (%p3629_p13), %s648_s5, 4294967040  ;;  %p3630_p6 = scmp.eq.s32.totalorder %s2902_s19, 0 }
 0x1c8   : > { %2726 = dma.done.wait (%p3630_p6), [#allocation9], 256   ;;  %p3631_p8 = pmov %p3630_p6 }
 0x1c9   : > { %p3632_p2 = pmov %p3630_p6 }
 0x1ca   : > { %2728 = vsyncadd (%p3631_p8), [#allocation9], 4294967040 }
 0x1cb   : > { %2730 = dma.done.wait (%p3632_p2), [#allocation12], 32   ;;  %p3633_p1 = pmov %p3632_p2 }
 0x1cd   : > { %2732 = vsyncadd (%p3633_p1), [#allocation12], 4294967264  ;;  %p3634_p5 = pmov %p3633_p1 }
 0x1ce   : > { %p3635_p11 = pmov %p3633_p1 }
 0x1cf   : > { %2734 = dma.done.wait (%p3634_p5), [#allocation15], 272  }
 0x1d0   : > { %2736 = vsyncadd (%p3635_p11), [#allocation15], 4294967024  ;;  %p3636_p9 = pmov %p3633_p1 }
 0x1d1   : > { %p3637_p10 = pmov %p3633_p1 }
 0x1d2   : > { %2738 = dma.done.wait (%p3636_p9), [#allocation18], 272  }
 0x1d3   : > { %2740 = vsyncadd (%p3637_p10), [#allocation18], 4294967024  ;;  %p3638_p0 = pmov %p3633_p1 }
 0x1d5   : > { %2742 = dma.done.wait (%p3638_p0), [#allocation21], 32   ;;  %p3639_p3 = pmov %p3638_p0 }
 0x1d6   : > { %p3640_p4 = pmov %p3638_p0 }
 0x1d7   : > { %2744 = vsyncadd (%p3639_p3), [#allocation21], 4294967264 }
 0x1d8   : > { %2746 = dma.done.wait (%p3640_p4), [#allocation24], 16   ;;  %p3641_p7 = pmov %p3638_p0 }
 0x1d9   : > { %v2793_v0 = vmov 0.0   ;;  %vm2794_vm0 = vmmov 0   ;;  %vm765_vm1 = vcmask 64512   ;;  %v757_v1 = vld [vmem:[%s3342_s11] sm:$0xf]  ;;  %v955_v13 = vlaneseq  ;;  %s3642_s19 = sld [smem:[#allocation38_spill]] }
 0x1da   : > { %2748 = vsyncadd (%p3641_p7), [#allocation24], 4294967280  ;;  %1967 = vmatprep.subr.bf16.mxu0 %v2793_v0  ;;  %1973 = vmatprep.subr.bf16.mxu1 %v2793_v0  ;;  %v758_v2 = vld [vmem:[%s3342_s11 + $0x4] sm:$0xf]  ;;  %v770_v3 = vsel %vm765_vm1, %v757_v1, 0  ;;  %vm1019_vm3 = vcmask 1043456  }
 0x1db   : > { %1969 = vmatprep.mubr.msk.bf16.mxu0 %vm2794_vm0, %v2793_v0  ;;  %1975 = vmatprep.mubr.msk.bf16.mxu1 %vm2794_vm0, %v2793_v0  ;;  %v816_v4 = vsel %vm765_vm1, %v758_v2, 0  ;;  %v759_v5 = vld [vmem:[%s3342_s11 + $0x8] sm:$0xf]  ;;  %v760_v6 = vld [vmem:[%s3342_s11 + $0xc] sm:$0xf]  ;;  %v956_v14 = vshrl.u32 %v955_v13, 7 }
 0x1dc   : > { %1968 = vmatpush3.bf16.xpose.msra.mxu0 %v770_v3  ;;  %1974 = vmatpush3.bf16.xpose.msra.mxu1 %v816_v4  ;;  %v753_v7 = vld [vmem:[%s3336_s23] sm:$0xf]  ;;  %v754_v8 = vld [vmem:[%s3336_s23 + $0x4] sm:$0xf]  ;;  %v862_v9 = vsel %vm765_vm1, %v759_v5, 0  ;;  %v908_v10 = vsel %vm765_vm1, %v760_v6, 0 }
 0x1dd   : > { %1979 = vmatprep.subr.bf16.mxu0 %v2793_v0  ;;  %1985 = vmatprep.subr.bf16.mxu1 %v2793_v0  ;;  %v755_v11 = vld [vmem:[%s3336_s23 + $0x8] sm:$0xf]  ;;  %v756_v12 = vld [vmem:[%s3336_s23 + $0xc] sm:$0xf]  ;;  %v960_v15 = vand.u32 127, %v955_v13  ;;  %vm1393_vm4 = vcmask 261120  }
 0x1de   : > { %v761_v1 = vld [vmem:[%s3344_s15] sm:$0xf]  ;;  %v762_v3 = vld [vmem:[%s3344_s15 + $0x4] sm:$0xf]  ;;  %s3643_s16 = sld [smem:[#allocation41_spill]]  ;;  %s750_s28 = scalar_lea.vmem [#allocation25], %s1890_s21 }
 0x1df   : > { %vm961_vm2 = vcmp.ge.s32.totalorder %v956_v14, %v960_v15  ;;  %v1021_v2 = vsel %vm1019_vm3, %v761_v1, 0  ;;  %v1067_v4 = vsel %vm1019_vm3, %v762_v3, 0  ;;  %v764_v15 = vld [vmem:[%s3344_s15 + $0xc] sm:$0xf]  ;;  %s1931_s13 = sshll.u32 %s3642_s19, 7  ;;  %s1621_s25 = sshll.u32 %s750_s28, 4  ;;  %s3485_s25 = int_to_ptr.vmem [resolvable:$true] %s1621_s25 }
 0x1e0   : > { %s3644_s29 = sld [smem:[#allocation56_spill]]  ;;  %s1607_s3 = scalar_lea.sflag [#allocation4], %s3322_s26 }
 0x1e1   : > { %s2795_s21 = smov [#allocation25]  }
 0x1e2   : > { %s2665_s7 = sshll.u32 %s2795_s21, 4  ;;  %s2666_s7 = int_to_ptr.vmem [resolvable:$false] %s2665_s7 }
 0x1e3   : > { %1970 = vmatmul.mubr.msk.bf16.vlgmr.msra.gmra.mrb[0].mxu0 %vm765_vm1, %v753_v7  ;;  %1976 = vmatmul.mubr.msk.bf16.vlgmr.msra.gmra.mrb[0].mxu1 %vm765_vm1, %v754_v8  ;;  %s2667_s20 = scalar_lea.vmem %s2666_s7, 256  ;;  %p2668_p2 = scmp.lt.s32.totalorder %s3485_s25, %s2666_s7 }
 0x1e4   : > { %1980 = vmatpush3.bf16.xpose.msra.mxu0 %v862_v9  ;;  %1986 = vmatpush3.bf16.xpose.msra.mxu1 %v908_v10  ;;  %v763_v9 = vld [vmem:[%s3344_s15 + $0x8] sm:$0xf]  ;;  %p3646_p13 = scmp.ne.s32.totalorder %s3643_s16, 0 }
 0x1e5   : > { %1981 = vmatprep.mubr.msk.bf16.mxu0 %vm2794_vm0, %v2793_v0  ;;  %1987 = vmatprep.mubr.msk.bf16.mxu1 %vm2794_vm0, %v2793_v0  ;;  %v1113_v13 = vsel %vm1019_vm3, %v763_v9, 0  ;;  %v1917_v9 = vld [vmem:[#allocation11] ss:$0 sm:$0xff] }
 0x1e6   : > { %1991 = vmatprep.subr.bf16.mxu0 %v2793_v0  ;;  %1997 = vmatprep.subr.bf16.mxu1 %v2793_v0  ;;  %s3645_s6 = smov %s3644_s29  ;;  %s3483_s9 = scalar_lea.hbm %s3644_s29, %s1931_s13 }
 0x1eb   : > { %1982 = vmatmul.mubr.msk.bf16.vlgmr.msra.gmra.mrb[4].mxu0 %vm765_vm1, %v755_v11  ;;  %1988 = vmatmul.mubr.msk.bf16.vlgmr.msra.gmra.mrb[4].mxu1 %vm765_vm1, %v756_v12 }
 0x1ec   : > { %1993 = vmatprep.mubr.msk.bf16.mxu0 %vm2794_vm0, %v2793_v0  ;;  %1999 = vmatprep.mubr.msk.bf16.mxu1 %vm2794_vm0, %v2793_v0 }
 0x1ed   : > { %1992 = vmatpush3.bf16.msra.mxu0 %v1021_v2  ;;  %1998 = vmatpush3.bf16.msra.mxu1 %v1067_v4 }
 0x1ee   : > { %2003 = vmatprep.subr.bf16.mxu0 %v2793_v0  ;;  %2009 = vmatprep.subr.bf16.mxu1 %v2793_v0 }
 0x2b6   : > { %v806_v16 = vpop.f32.mrb[0].mxu0  ;;  %v852_v17 = vpop.f32.mrb[0].mxu1 }
 0x2b7   : > { %v950_v18 = vmul.f32 0.35355338, %v806_v16  ;;  %v1971_v19 = vpop.f32.mrb[1].mxu0  ;;  %v951_v20 = vmul.f32 0.35355338, %v852_v17  ;;  %v1977_v21 = vpop.f32.mrb[1].mxu1 }
 0x2b8   : > { %v809_v22 = vpop.f32.mrb[2].mxu0  ;;  %v855_v23 = vpop.f32.mrb[2].mxu1 }
 0x2b9   : > { %v1972_v24 = vpop.f32.mrb[3].mxu0  ;;  %v1978_v25 = vpop.f32.mrb[3].mxu1  ;;  %v964_v26 = vsel %vm961_vm2, %v950_v18, -1e+30  ;;  %v965_v27 = vsel %vm961_vm2, %v951_v20, -1e+30 }
 0x2ba   : > { %v968_v28 = vsel %vm765_vm1, %v964_v26, -inf  ;;  %v971_v29 = vsel %vm765_vm1, %v965_v27, -inf  ;;  %v1159_v18 = vsel %vm1019_vm3, %v764_v15, 0  ;;  %v1205_v20 = vld [vmem:[#allocation10] sm:$0xf] }
 0x2bb   : > { %969 = vmax.xlane.f32.xlu0 %v968_v28  ;;  %v1213_v23 = vsel %vm1019_vm3, %v1205_v20, 0 }
 0x2be   : > { %v898_v30 = vpop.f32.mrb[4].mxu0  ;;  %v944_v31 = vpop.f32.mrb[4].mxu1 }
 0x2bf   : > { %v952_v32 = vmul.f32 0.35355338, %v898_v30  ;;  %972 = vmax.xlane.f32.xlu0 %v971_v29  ;;  %v1983_v33 = vpop.f32.mrb[5].mxu0  ;;  %v953_v34 = vmul.f32 0.35355338, %v944_v31  ;;  %v1989_v35 = vpop.f32.mrb[5].mxu1 }
 0x2c0   : > { %v901_v36 = vpop.f32.mrb[6].mxu0  ;;  %v947_v37 = vpop.f32.mrb[6].mxu1  ;;  %v1207_v29 = vld [vmem:[#allocation10 + $0x8] sm:$0xf]  ;;  %v1208_v35 = vld [vmem:[#allocation10 + $0xc] sm:$0xf] }
 0x2c1   : > { %v1984_v38 = vpop.f32.mrb[7].mxu0  ;;  %v1990_v39 = vpop.f32.mrb[7].mxu1  ;;  %v966_v40 = vsel %vm961_vm2, %v952_v32, -1e+30  ;;  %v967_v41 = vsel %vm961_vm2, %v953_v34, -1e+30 }
 0x2c2   : > { %v974_v42 = vsel %vm765_vm1, %v966_v40, -inf  ;;  %v977_v43 = vsel %vm765_vm1, %v967_v41, -inf  ;;  %v1305_v33 = vsel %vm1019_vm3, %v1207_v29, 0  ;;  %v1918_v29 = vld [vmem:[#allocation13] ss:$0 sm:$0xff] }
 0x2c3   : > { %975 = vmax.xlane.f32.xlu1 %v974_v42 }
 0x2c7   : > { %978 = vmax.xlane.f32.xlu1 %v977_v43 }
 0x348   : > { %v970_v44 = vpop.xlane.xlu0 %969 }
 0x349   : > { %v980_v45 = vsub.f32 %v964_v26, %v970_v44 }
 0x34b   : > { %v984_v46 = vmul.f32 1.442695, %v980_v45 }
 0x34c   : > { %v973_v47 = vpop.xlane.xlu0 %972 }
 0x34d   : > { %2241 = vpow2.f32 %v984_v46  ;;  %v981_v48 = vsub.f32 %v965_v27, %v973_v47  ;;  %v1206_v27 = vld [vmem:[#allocation10 + $0x4] sm:$0xf] }
 0x34e   : > { %v1259_v28 = vsel %vm1019_vm3, %v1206_v27, 0 }
 0x34f   : > { %v986_v49 = vmul.f32 1.442695, %v981_v48 }
 0x350   : > { %v976_v50 = vpop.xlane.xlu1 %975 }
 0x351   : > { %2243 = vpow2.f32 %v986_v49  ;;  %v982_v51 = vsub.f32 %v966_v40, %v976_v50  ;;  %v1351_v40 = vsel %vm1019_vm3, %v1208_v35, 0  ;;  %v2239_v35 = vld [vmem:[#allocation19] sm:$0xff]  }
 0x353   : > { %v988_v52 = vmul.f32 1.442695, %v982_v51 }
 0x354   : > { %v979_v53 = vpop.xlane.xlu1 %978 }
 0x355   : > { %2245 = vpow2.f32 %v988_v52  ;;  %v983_v54 = vsub.f32 %v967_v41, %v979_v53 }
 0x357   : > { %v2242_v55 = vpop.eup %2241  ;;  %v990_v56 = vmul.f32 1.442695, %v983_v54 }
 0x358   : > { %v992_v57 = vsel %vm765_vm1, %v2242_v55, 0.0 }
 0x359   : > { %2247 = vpow2.f32 %v990_v56  ;;  %993 = vadd.xlane.f32.xlu0 %v992_v57 }
 0x35b   : > { %v2244_v58 = vpop.eup %2243 }
 0x35c   : > { %v995_v59 = vsel %vm765_vm1, %v2244_v58, 0.0 }
 0x35d   : > { %996 = vadd.xlane.f32.xlu1 %v995_v59 }
 0x35f   : > { %v2246_v60 = vpop.eup %2245 }
 0x360   : > { %v998_v61 = vsel %vm765_vm1, %v2246_v60, 0.0 }
 0x361   : > { %999 = vadd.xlane.f32.xlu0 %v998_v61 }
 0x363   : > { %v2248_v62 = vpop.eup %2247 }
 0x364   : > { %v1001_v63 = vsel %vm765_vm1, %v2248_v62, 0.0 }
 0x365   : > { %1002 = vadd.xlane.f32.xlu1 %v1001_v63 }
 0x3e6   : > { %v994_v5 = vpop.xlane.xlu0 %993 }
 0x3e7   : > { %2249 = vrcp.f32 %v994_v5 }
 0x3ea   : > { %v997_v6 = vpop.xlane.xlu1 %996 }
 0x3eb   : > { %2251 = vrcp.f32 %v997_v6 }
 0x3ee   : > { %v1000_v7 = vpop.xlane.xlu0 %999 }
 0x3ef   : > { %2253 = vrcp.f32 %v1000_v7 }
 0x3f1   : > { %v2250_v8 = vpop.eup %2249 }
 0x3f2   : > { %v1008_v10 = vmul.f32 %v2250_v8, %v2242_v55  ;;  %v1003_v11 = vpop.xlane.xlu1 %1002 }
 0x3f3   : > { %2255 = vrcp.f32 %v1003_v11 }
 0x3f4   : > { %v1012_v12 = vpack.c.bf16 %v1008_v10, %v1008_v10 }
 0x3f5   : > { %v2252_v14 = vpop.eup %2251 }
 0x3f6   : > { %v1009_v16 = vmul.f32 %v2252_v14, %v2244_v58  ;;  %1994 = vmatmul.mubr.msk.bf16.vlgmr.msra.gmra.mrb[8].mxu0 %vm765_vm1, %v1012_v12  ;;  %v752_v14 = vld [vmem:[%s3328_s27] sm:$0xff]  ;;  %s2661_s27 = scalar_lea.vmem %s3485_s25, 128 }
 0x3f7   : > { %2004 = vmatpush3.bf16.msra.mxu0 %v1113_v13  ;;  %2005 = vmatprep.mubr.msk.bf16.mxu0 %vm2794_vm0, %v2793_v0  ;;  %p2662_p12 = scmp.ne.s32.totalorder %s3485_s25, %s2661_s27  ;;  %p2669_p1 = scmp.lt.s32.totalorder %s2667_s20, %s2661_s27 }
 0x3f8   : > { %v1013_v17 = vpack.c.bf16 %v1009_v16, %v1009_v16  ;;  %2015 = vmatprep.subr.bf16.mxu0 %v2793_v0 }
 0x3f9   : > { %v2254_v19 = vpop.eup %2253  ;;  %p2663_p6 = pnand %p2662_p12, %p3646_p13  ;;  %p2670_p5 = por %p2669_p1, %p2668_p2 }
 0x3fa   : > { %v1010_v21 = vmul.f32 %v2254_v19, %v2246_v60  ;;  %2000 = vmatmul.mubr.msk.bf16.vlgmr.msra.gmra.mrb[8].mxu1 %vm765_vm1, %v1013_v17 }
 0x3fb   : > { %2010 = vmatpush3.bf16.msra.mxu1 %v1159_v18  ;;  %2011 = vmatprep.mubr.msk.bf16.mxu1 %vm2794_vm0, %v2793_v0  ;;  %p2664_p8 = pneg %p2663_p6 }
 0x3fc   : > { %v1014_v22 = vpack.c.bf16 %v1010_v21, %v1010_v21  ;;  %2021 = vmatprep.subr.bf16.mxu1 %v2793_v0 }
 0x3fd   : > { %v2256_v24 = vpop.eup %2255  ;;  %p2671_p11 = pnand %p2670_p5, %p2664_p8 }
 0x3fe   : > { %v1011_v25 = vmul.f32 %v2256_v24, %v2248_v62  ;;  %2006 = vmatmul.mubr.msk.bf16.vlgmr.msra.gmra.mrb[12].mxu0 %vm765_vm1, %v1014_v22  ;;  %v2238_v24 = vld [vmem:[#allocation16 + $0x8] sm:$0xff]  }
 0x3ff   : > { %2016 = vmatpush3.bf16.msra.mxu0 %v1213_v23  ;;  %2017 = vmatprep.mubr.msk.bf16.mxu0 %vm2794_vm0, %v2793_v0  ;;  %v2237_v23 = vld [vmem:[#allocation16] sm:$0xff]  }
 0x400   : > { %v1015_v26 = vpack.c.bf16 %v1011_v25, %v1011_v25  ;;  %2027 = vmatprep.subr.bf16.mxu0 %v2793_v0 }
 0x402   : > { %2012 = vmatmul.mubr.msk.bf16.vlgmr.msra.gmra.mrb[12].mxu1 %vm765_vm1, %v1015_v26 }
 0x403   : > { %2023 = vmatprep.mubr.msk.bf16.mxu1 %vm2794_vm0, %v2793_v0  ;;  %2022 = vmatpush3.bf16.msra.mxu1 %v1259_v28 }
 0x404   : > { %2033 = vmatprep.subr.bf16.mxu1 %v2793_v0 }
 0x4c9   : > { %v1057_v30 = vpop.f32.mrb[8].mxu0 }
 0x4ca   : > { %v1201_v31 = vpack.c.bf16 %v1057_v30, %v1057_v30  ;;  %v1995_v32 = vpop.f32.mrb[9].mxu0 }
 0x4cb   : > { %v1060_v34 = vpop.f32.mrb[10].mxu0 }
 0x4cc   : > { %v1996_v36 = vpop.f32.mrb[11].mxu0  ;;  %2018 = vmatmul.mubr.msk.bf16.vlgmr.msra.gmra.mrb[16].mxu0 %vm765_vm1, %v1201_v31  ;;  %v1919_v31 = vld [vmem:[#allocation14] ss:$0 sm:$0xff] }
 0x4cd   : > { %v1103_v37 = vpop.f32.mrb[8].mxu1  ;;  %2028 = vmatpush3.bf16.msra.mxu0 %v1305_v33  ;;  %2029 = vmatprep.mubr.msk.bf16.mxu0 %vm2794_vm0, %v2793_v0  ;;  %v2240_v36 = vld [vmem:[#allocation19 + $0x8] sm:$0xff]  }
 0x4ce   : > { %v1202_v38 = vpack.c.bf16 %v1103_v37, %v1103_v37  ;;  %v2001_v39 = vpop.f32.mrb[9].mxu1  ;;  %2039 = vmatprep.subr.bf16.mxu0 %v2793_v0  ;;  %v1920_v37 = vld [vmem:[#allocation17] ss:$0 sm:$0xff] }
 0x4cf   : > { %v1106_v41 = vpop.f32.mrb[10].mxu1 }
 0x4d0   : > { %v2002_v42 = vpop.f32.mrb[11].mxu1  ;;  %2024 = vmatmul.mubr.msk.bf16.vlgmr.msra.gmra.mrb[16].mxu1 %vm765_vm1, %v1202_v38 }
 0x4d1   : > { %v1149_v43 = vpop.f32.mrb[12].mxu0  ;;  %2034 = vmatpush3.bf16.msra.mxu1 %v1351_v40  ;;  %2035 = vmatprep.mubr.msk.bf16.mxu1 %vm2794_vm0, %v2793_v0 }
 0x4d2   : > { %v1203_v44 = vpack.c.bf16 %v1149_v43, %v1149_v43  ;;  %v2007_v45 = vpop.f32.mrb[13].mxu0  ;;  %2047 = vmatprep.subr.bf16.mxu1 %v2793_v0 }
 0x4d3   : > { %v1152_v46 = vpop.f32.mrb[14].mxu0  ;;  %v1924_v45 = vld [vmem:[#allocation20] ss:$0 sm:$0xff] }
 0x4d4   : > { %v2008_v47 = vpop.f32.mrb[15].mxu0  ;;  %2030 = vmatmul.mubr.msk.bf16.vlgmr.msra.gmra.mrb[20].mxu0 %vm765_vm1, %v1203_v44 }
 0x4d5   : > { %v1195_v48 = vpop.f32.mrb[12].mxu1  ;;  %2043 = vmatprep.mubr.msk.bf16.mxu0 %vm2794_vm0, %v2793_v0  ;;  %2040 = vmatpush3.bf16.msra.mxu0 %v2237_v23 }
 0x4d6   : > { %v1204_v49 = vpack.c.bf16 %v1195_v48, %v1195_v48  ;;  %v2013_v50 = vpop.f32.mrb[13].mxu1  ;;  %2041 = vmatprep.subr.bf16.mxu0 %v2793_v0 }
 0x4d7   : > { %v1198_v51 = vpop.f32.mrb[14].mxu1 }
 0x4d8   : > { %v2014_v52 = vpop.f32.mrb[15].mxu1  ;;  %2036 = vmatmul.mubr.msk.bf16.vlgmr.msra.gmra.mrb[20].mxu1 %vm765_vm1, %v1204_v49 }
 0x4d9   : > { %2051 = vmatprep.mubr.msk.bf16.mxu1 %vm2794_vm0, %v2793_v0  ;;  %2042 = vmatpush3.bf16.msra.mxu0 %v2238_v24 }
 0x4da   : > { %2048 = vmatpush3.bf16.msra.mxu1 %v2239_v35 }
 0x4db   : > { %2049 = vmatprep.subr.bf16.mxu1 %v2793_v0 }
 0x4de   : > { %2050 = vmatpush3.bf16.msra.mxu1 %v2240_v36 }
 0x59f   : > { %v1249_v53 = vpop.f32.mrb[16].mxu0 }
 0x5a0   : > { %v2019_v54 = vpop.f32.mrb[17].mxu0  ;;  %v1394_v58 = vsel %vm1393_vm4, %v1249_v53, 0.0 }
 0x5a1   : > { %v1252_v55 = vpop.f32.mrb[18].mxu0 }
 0x5a2   : > { %v2020_v56 = vpop.f32.mrb[19].mxu0 }
 0x5a3   : > { %v1295_v57 = vpop.f32.mrb[16].mxu1 }
 0x5a4   : > { %v1395_v59 = vsel %vm1393_vm4, %v1295_v57, 0.0  ;;  %v2025_v60 = vpop.f32.mrb[17].mxu1 }
 0x5a5   : > { %v1396_v61 = vadd.f32 %v1395_v59, %v1394_v58  ;;  %v1298_v62 = vpop.f32.mrb[18].mxu1 }
 0x5a6   : > { %v2026_v63 = vpop.f32.mrb[19].mxu1 }
 0x5a7   : > { %v1341_v1 = vpop.f32.mrb[20].mxu0  ;;  %v1929_v63 = vld [vmem:[#allocation23] ss:$0 sm:$0xff] }
 0x5a8   : > { %v1397_v2 = vsel %vm1393_vm4, %v1341_v1, 0.0  ;;  %v2031_v3 = vpop.f32.mrb[21].mxu0 }
 0x5a9   : > { %v1398_v4 = vadd.f32 %v1397_v2, %v1396_v61  ;;  %v1344_v5 = vpop.f32.mrb[22].mxu0  ;;  %v1928_v61 = vld [vmem:[#allocation22] ss:$0 sm:$0xff] }
 0x5aa   : > { %v2032_v6 = vpop.f32.mrb[23].mxu0 }
 0x5ab   : > { %v1387_v7 = vpop.f32.mrb[20].mxu1 }
 0x5ac   : > { %v1399_v8 = vsel %vm1393_vm4, %v1387_v7, 0.0  ;;  %v2037_v10 = vpop.f32.mrb[21].mxu1 }
 0x5ad   : > { %v1400_v11 = vadd.f32 %v1399_v8, %v1398_v4  ;;  %v1390_v12 = vpop.f32.mrb[22].mxu1 }
 0x5ae   : > { %v2038_v13 = vpop.f32.mrb[23].mxu1 }
 0x5af   : > { %v1408_v15 = vadd.f32 %v1917_v9, %v1400_v11 }
 0x5b1   : > { %v1409_v16 = vadd.f32 %v1408_v15, %v752_v14 }
 0x5b3   : > { %v1412_v17 = vsel %vm1393_vm4, %v1409_v16, 0.0 }
 0x5b4   : > { %1413 = vadd.xlane.f32.xlu0 %v1412_v17 }
 0x641   : > { %v1414_v18 = vpop.xlane.xlu0 %1413 }
 0x642   : > { %v1416_v19 = vmul.f32 0.03125, %v1414_v18 }
 0x644   : > { %v1417_v20 = vsub.f32 %v1409_v16, %v1416_v19 }
 0x646   : > { %v1418_v21 = vmul.f32 %v1417_v20, %v1417_v20 }
 0x648   : > { %v1419_v22 = vsel %vm1393_vm4, %v1418_v21, 0.0 }
 0x649   : > { %1420 = vadd.xlane.f32.xlu1 %v1419_v22 }
 0x6d6   : > { %v1421_v25 = vpop.xlane.xlu1 %1420 }
 0x6d7   : > { %v1422_v26 = vmul.f32 0.03125, %v1421_v25 }
 0x6d9   : > { %v1423_v27 = vadd.f32 1e-05, %v1422_v26 }
 0x6db   : > { %2257 = vrsqrt.f32 %v1423_v27 }
 0x6e5   : > { %v2258_v28 = vpop.eup %2257 }
 0x6e6   : > { %v1425_v30 = vmul.f32 %v2258_v28, %v1417_v20 }
 0x6e8   : > { %v1432_v32 = vmul.f32 %v1918_v29, %v1425_v30 }
 0x6ea   : > { %v1439_v33 = vadd.f32 %v1919_v31, %v1432_v32 }
 0x6ec   : > { %v1440_v34 = vpack.c.bf16 %v1439_v33, %v1439_v33 }
 0x6ee   : > { %2044 = vmatmul.mubr.msk.bf16.vlgmr.msra.gmra.mrb[24].mxu0 %vm1393_vm4, %v1440_v34 }
 0x7c1   : > { %v1501_v38 = vpop.f32.mrb[24].mxu0 }
 0x7c2   : > { %v1502_v39 = vadd.f32 %v1920_v37, %v1501_v38  ;;  %v2045_v40 = vpop.f32.mrb[25].mxu0 }
 0x7c3   : > { %v1504_v41 = vpop.f32.mrb[26].mxu0 }
 0x7c4   : > { %v1507_v42 = vmax.f32 %v1502_v39, 0.0  ;;  %v2046_v43 = vpop.f32.mrb[27].mxu0 }
 0x7c6   : > { %v1508_v44 = vpack.c.bf16 %v1507_v42, %v1507_v42 }
 0x7c8   : > { %2052 = vmatmul.mubr.msk.bf16.vlgmr.msra.gmra.mrb[24].mxu1 %vm1393_vm4, %v1508_v44 }
 0x89b   : > { %v1569_v46 = vpop.f32.mrb[24].mxu1 }
 0x89c   : > { %v1570_v47 = vadd.f32 %v1924_v45, %v1569_v46  ;;  %v2053_v48 = vpop.f32.mrb[25].mxu1 }
 0x89d   : > { %v1572_v49 = vpop.f32.mrb[26].mxu1 }
 0x89e   : > { %v2054_v50 = vpop.f32.mrb[27].mxu1  ;;  %v1575_v51 = vadd.f32 %v1570_v47, %v1507_v42 }
 0x8a0   : > { %v1578_v0 = vsel %vm1393_vm4, %v1575_v51, 0.0 }
 0x8a1   : > { %1579 = vadd.xlane.f32.xlu0 %v1578_v0 }
 0x92e   : > { %v1580_v52 = vpop.xlane.xlu0 %1579 }
 0x92f   : > { %v1581_v53 = vmul.f32 0.03125, %v1580_v52 }
 0x931   : > { %v1582_v54 = vsub.f32 %v1575_v51, %v1581_v53 }
 0x933   : > { %v1583_v55 = vmul.f32 %v1582_v54, %v1582_v54 }
 0x935   : > { %v1584_v56 = vsel %vm1393_vm4, %v1583_v55, 0.0 }
 0x936   : > { %1585 = vadd.xlane.f32.xlu1 %v1584_v56 }
 0x9c3   : > { %v1586_v57 = vpop.xlane.xlu1 %1585 }
 0x9c4   : > { %v1587_v58 = vmul.f32 0.03125, %v1586_v57 }
 0x9c6   : > { %v1588_v59 = vadd.f32 1e-05, %v1587_v58 }
 0x9c8   : > { %2259 = vrsqrt.f32 %v1588_v59 }
 0x9d2   : > { %v2260_v60 = vpop.eup %2259 }
 0x9d3   : > { %v1590_v62 = vmul.f32 %v2260_v60, %v1582_v54 }
 0x9d5   : > { %v1597_v1 = vmul.f32 %v1928_v61, %v1590_v62 }
 0x9d7   : > { %v1604_v2 = vadd.f32 %v1929_v63, %v1597_v1 }
 0x9d9   : > { %1605 = vst.msk [vmem:[%s750_s28] sm:$0xff] %vm1393_vm4, %v1604_v2 }
 0x9da   : > { %2674 = shalt.err (!%p2671_p11)
}
 0x9db   : > { %s2675_s26 = scalar_lea.hbm %s3483_s9, 128  ;;  %s2679_s11 = scalar_lea.hbm %s3645_s6, 256 }
 0x9dc   : > { %p2676_p9 = scmp.ne.s32.totalorder %s3483_s9, %s2675_s26  ;;  %p2680_p3 = scmp.lt.u32.totalorder %s3483_s9, %s3645_s6 }
 0x9dd   : > { %p2681_p4 = scmp.lt.u32.totalorder %s2679_s11, %s2675_s26  ;;  %p2683_p12 = scmp.lt.u32.totalorder %s2675_s26, %s3483_s9 }
 0x9de   : > { %p2677_p10 = pnand %p2676_p9, %p3646_p13 }
 0x9df   : > { %p2682_p7 = por %p2681_p4, %p2680_p3 }
 0x9e0   : > { %p2678_p0 = pneg %p2677_p10 }
 0x9e1   : > { %p2684_p6 = por %p2683_p12, %p2682_p7 }
 0x9e3   : > { %p2685_p8 = pnand %p2684_p6, %p2678_p0 }
 0x9e5   : > { %2688 = shalt.err (!%p2685_p8)
}
 0x9e6   : > { %2103 = dma.vmem_to_hbm [thread:$0]  (%p3646_p13), %s3485_s25, 128, %s3483_s9, %s1607_s3  }
 0x9e7 PF: > { %s3647_s19 = sld [smem:[#allocation36_spill]]  ;;  %s3648_s13 = sld [smem:[#allocation43_spill]] }
 0x9e8   : > { %p3650_p1 = scmp.ge.s32.totalorder %s2775_s18, 2 }
 0x9ed   : > { %s1633_s28 = sand.u32 1, %s3647_s19   ;;  %p3649_p2 = scmp.ne.s32.totalorder %s3648_s13, 0 }
 0x9ee   : > { %s1634_s12 = scalar_lea.sflag [#allocation4], %s1633_s28 }
 0x9ef   : > { %p2150_p5 = pnand %p3650_p1, %p3649_p2 }
 0x9f1   : > { %2750 = dma.done.wait (!%p2150_p5), %s1634_s12, 128  }
 0x9f2   : > { %2752 = vsyncadd (!%p2150_p5), %s1634_s12, 4294967168  ;;  %s41_s18 = sadd.s32 1, %s2775_s18   ;;  %s3651_s22 = sld [smem:[#allocation37_spill]] }
 0x9f3   : > { %p38_p11 = scmp.ge.s32.totalorder %s41_s18, 4   ;;  %s3652_s15 = sld [smem:[#allocation42_spill]] }
 0x9f4   : > { %s3653_s27 = sld [smem:[#allocation40_spill]]  ;;  %s3654_s29 = smov %s2759_s30 }
 0x9f5   : > { %s3656_s16 = smov %s2771_s17  ;;  %40 = sbr.rel (!%p38_p11) target bundleno = 29 (0x1d), region = 198 }
 0x9f8   : > { %s3655_s30 = smov %s3651_s22 }
 0x9fa   : > { %s3657_s17 = smov %s3653_s27 }
 0x9fc   :  { %1639 = vsyncpa [#allocation3], 1 }
 0x9fd   :  { %1641 = vsyncpa [#allocation3 + $0x1], 1 }
 0x9fe   :  { %1642 = vsyncpa [#allocation6], 1 }
 0x9ff   :  { %1644 = vsyncpa [#allocation6 + $0x1], 1 }
 0xa00   :  { %1645 = vsyncpa [#allocation9], 1 }
 0xa01   :  { %1647 = vsyncpa [#allocation9 + $0x1], 1 }
 0xa02   :  { %1648 = vsyncpa [#allocation12], 1 }
 0xa03   :  { %1649 = vsyncpa [#allocation15], 1 }
 0xa04   :  { %1650 = vsyncpa [#allocation18], 1 }
 0xa05   :  { %1651 = vsyncpa [#allocation21], 1 }
 0xa06   :  { %1652 = vsyncpa [#allocation24], 1 }
 0xa07   :  { %1653 = vsyncpa [#allocation4], 1 }
 0xa08   :  { %1655 = vsyncpa [#allocation4 + $0x1], 1 }

</bundles_post_ra>
